<compile_context>
chip_gen: v5e
topology: v5e:2x2
jax: 0.10.0
libtpu: 0.0.40
codegen_flags: <defaults>
</compile_context>

<pallas_src>
import functools

import jax
import jax.numpy as jnp
from jax import lax
from jax.experimental import pallas as pl
from jax.experimental.pallas import tpu as pltpu

N_NODES = 62        # "GCN 62*5" in the module docstring
IN_FEAT = 5
AUG_FEAT = 8        # augment_feature (GAT hidden width)
GCN1_OUT = 10
GCN2_OUT = 15
CAT_FEAT = IN_FEAT + GCN1_OUT + GCN2_OUT   # 30  -> mlp input is 62*30
HIDDEN = 128
NCLASS = 3
LRELU_SLOPE = 0.2
ALPHA = 0.2
BN_EPS = 1e-5


def _leaky_relu(x, slope):
    return jnp.where(x > 0, x, slope * x)


def normalize_adj(adj):
    # TODO(synk): exact `adj.normalize_adj` source not provided; using the
    # standard symmetric normalization D^-1/2 (A + I) D^-1/2.
    a_hat = adj + jnp.eye(adj.shape[0], dtype=adj.dtype)
    d = jnp.sum(a_hat, axis=1)
    d_inv_sqrt = 1.0 / jnp.sqrt(d)
    return a_hat * d_inv_sqrt[:, None] * d_inv_sqrt[None, :]


# --------------------------- Pallas kernels ---------------------------------


def _graph_kernel(x_ref, lap_ref, watt_ref, a1_ref, a2_ref, w1_ref, w2_ref,
                  x1_ref, x2_ref, lap_out_ref, *, lrelu, alpha):
    """GAT attention + laplacian mixing + both GCN layers for TB batch rows."""
    x3 = x_ref[...]                     # (TB, N, Fin)
    lap = lap_ref[...]                  # (N, N) shared normalized adjacency
    tb = x3.shape[0]

    # --- GATLayer: e[b,i,j] = (xW)a1[i] + (xW)a2[j]  (pyGAT-style logits) ---
    # TODO(synk): GATLayer source not provided; assuming standard pyGAT
    # attention logits with no internal activation (GAAT.forward applies lrelu).
    w_att_b = jnp.broadcast_to(watt_ref[...], (tb, IN_FEAT, AUG_FEAT))
    wh = jnp.einsum('bnf,bfa->bna', x3, w_att_b,
                    preferred_element_type=jnp.float32)          # (TB, N, Faug)
    a1_b = jnp.broadcast_to(a1_ref[...], (tb, 1, AUG_FEAT))
    a2_b = jnp.broadcast_to(a2_ref[...], (tb, 1, AUG_FEAT))
    f1 = jnp.einsum('bna,bka->bnk', wh, a1_b,
                    preferred_element_type=jnp.float32)          # (TB, N, 1)
    f2t = jnp.einsum('bka,bna->bkn', a2_b, wh,
                     preferred_element_type=jnp.float32)         # (TB, 1, N)
    e = f1 + f2t                                                 # (TB, N, N)

    delta_lap = _leaky_relu(e, lrelu)
    mask = (lap > 0.1)[None, :, :]                               # (1, N, N)
    att = jnp.where(mask, delta_lap, jnp.full_like(delta_lap, -9e15))

    # torch F.softmax(attention, dim=1) on (B, N, N) == softmax over axis 1.
    m = jnp.max(att, axis=1, keepdims=True)                      # (TB, 1, N)
    p = jnp.exp(att - m)
    denom = jnp.sum(p, axis=1, keepdims=True)                    # (TB, 1, N)
    att = p * pl.reciprocal(denom, approx=True)

    new_lap = lap[None, :, :] * (1.0 - alpha) + att * alpha      # (TB, N, N)
    lap_out_ref[...] = new_lap

    # --- GCNLayer(in, out, bias=False): adj @ (x @ W), batched over TB ---
    w1_b = jnp.broadcast_to(w1_ref[...], (tb, IN_FEAT, GCN1_OUT))
    w2_b = jnp.broadcast_to(w2_ref[...], (tb, GCN1_OUT, GCN2_OUT))

    s1 = jnp.einsum('bnf,bfk->bnk', x3, w1_b,
                    preferred_element_type=jnp.float32)          # (TB, N, 10)
    h1 = _leaky_relu(jnp.einsum('bij,bjk->bik', new_lap, s1,
                                preferred_element_type=jnp.float32), lrelu)
    x1_ref[...] = h1

    s2 = jnp.einsum('bnf,bfk->bnk', h1, w2_b,
                    preferred_element_type=jnp.float32)          # (TB, N, 15)
    h2 = _leaky_relu(jnp.einsum('bij,bjk->bik', new_lap, s2,
                                preferred_element_type=jnp.float32), lrelu)
    x2_ref[...] = h2


def _head_matmul_kernel(xa_ref, xb_ref, xc_ref, wa_ref, wb_ref, wc_ref, b_ref,
                        h_ref, *, lrelu):
    """lrelu(flatten(cat(x,x1,x2)) @ W_mlp + b), B-tiled, lane-dense output.

    The torch flatten x.view(B, 62*30) is decomposed into three group matmuls
    using host-permuted weight slabs (exactly equivalent sum)."""
    acc = jnp.dot(xa_ref[...], wa_ref[...], preferred_element_type=jnp.float32)
    acc = acc + jnp.dot(xb_ref[...], wb_ref[...],
                        preferred_element_type=jnp.float32)
    acc = acc + jnp.dot(xc_ref[...], wc_ref[...],
                        preferred_element_type=jnp.float32)
    acc = acc + b_ref[...]
    h_ref[...] = _leaky_relu(acc, lrelu)


def _bn_classifier_kernel(h_ref, gam_ref, bet_ref, w2_ref, b2_ref, out_ref):
    h = h_ref[...]                                               # (B, 128)
    # nn.BatchNorm1d(128) in default training mode: biased batch statistics.
    mean = jnp.mean(h, axis=0, keepdims=True)
    var = jnp.mean(jnp.square(h - mean), axis=0, keepdims=True)
    hn = gam_ref[...] * (h - mean) * lax.rsqrt(var + BN_EPS) + bet_ref[...]
    out_ref[...] = jnp.dot(hn, w2_ref[...],
                           preferred_element_type=jnp.float32) + b2_ref[...]


# --------------------------- wrapper -----------------------------------------


def _choose_graph_tile(B):
    # >= 2 grid blocks when B > 1 (feeds both v7x TensorCores), <= 8 rows/block.
    return min(8, max(1, B // 2))


def _choose_head_tile(B_pad):
    # sublane (second-to-last) block dim must be a multiple of 8 or full.
    if B_pad % 8 != 0:
        return B_pad
    return 64 if B_pad % 64 == 0 else 8


def gaat_forward(x, lap_norm, params, lrelu=LRELU_SLOPE, alpha=ALPHA,
                 use_bf16_head=False):
    B, N, Fin = x.shape

    # ---- batch tiling / padding -------------------------------------------
    tb = _choose_graph_tile(B)
    n_blk = -(-B // tb)                      # cdiv
    B_pad = n_blk * tb
    x_pad = x if B_pad == B else jnp.pad(x, ((0, B_pad - B), (0, 0), (0, 0)))

    # ---- kernel 1: graph (attention + laplacian + GCN1/GCN2) ---------------
    graph_call = pl.pallas_call(
        functools.partial(_graph_kernel, lrelu=lrelu, alpha=alpha),
        out_shape=(
            jax.ShapeDtypeStruct((B_pad, N, GCN1_OUT), jnp.float32),
            jax.ShapeDtypeStruct((B_pad, N, GCN2_OUT), jnp.float32),
            jax.ShapeDtypeStruct((B_pad, N, N), jnp.float32),
        ),
        grid=(n_blk,),
        in_specs=[
            pl.BlockSpec((tb, N, Fin), lambda b: (b, 0, 0)),
            pl.BlockSpec((N, N), lambda b: (0, 0)),
            pl.BlockSpec((Fin, AUG_FEAT), lambda b: (0, 0)),
            pl.BlockSpec((1, AUG_FEAT), lambda b: (0, 0)),
            pl.BlockSpec((1, AUG_FEAT), lambda b: (0, 0)),
            pl.BlockSpec((Fin, GCN1_OUT), lambda b: (0, 0)),
            pl.BlockSpec((GCN1_OUT, GCN2_OUT), lambda b: (0, 0)),
        ],
        out_specs=(
            pl.BlockSpec((tb, N, GCN1_OUT), lambda b: (b, 0, 0)),
            pl.BlockSpec((tb, N, GCN2_OUT), lambda b: (b, 0, 0)),
            pl.BlockSpec((tb, N, N), lambda b: (b, 0, 0)),
        ),
        compiler_params=pltpu.CompilerParams(dimension_semantics=("parallel",)),
    )
    x1, x2, laplacian = graph_call(
        x_pad, lap_norm, params["w_att"], params["a1"], params["a2"],
        params["w_gcn1"], params["w_gcn2"])

    # ---- host-side free reshapes (no concat, no HBM round trip of x_cat) ----
    # torch.cat((x, x1, x2), 2).view(B, -1) @ W  ==  xa@Wa + xb@Wb + xc@Wc
    # where Wa/Wb/Wc are node-major row groups of W (gathered once below).
    xa = x_pad.reshape(B_pad, N * IN_FEAT)
    xb = x1.reshape(B_pad, N * GCN1_OUT)
    xc = x2.reshape(B_pad, N * GCN2_OUT)

    w3 = params["w_mlp"].reshape(N_NODES, CAT_FEAT, HIDDEN)
    wa = w3[:, :IN_FEAT, :].reshape(N_NODES * IN_FEAT, HIDDEN)
    wb = w3[:, IN_FEAT:IN_FEAT + GCN1_OUT, :].reshape(N_NODES * GCN1_OUT, HIDDEN)
    wc = w3[:, IN_FEAT + GCN1_OUT:, :].reshape(N_NODES * GCN2_OUT, HIDDEN)

    if use_bf16_head:
        # bf16 MXU inputs, f32 accumulation (v6e/v7x speedup; small numeric diff).
        xa, xb, xc = (t.astype(jnp.bfloat16) for t in (xa, xb, xc))
        wa, wb, wc = (t.astype(jnp.bfloat16) for t in (wa, wb, wc))

    # ---- kernel 2: 62*30 -> 128 MLP, B-tiled, lane-dense (., 128) output ----
    tbh = _choose_head_tile(B_pad)
    head_call = pl.pallas_call(
        functools.partial(_head_matmul_kernel, lrelu=lrelu),
        out_shape=jax.ShapeDtypeStruct((B_pad, HIDDEN), jnp.float32),
        grid=(B_pad // tbh,),
        in_specs=[
            pl.BlockSpec((tbh, N * IN_FEAT), lambda b: (b, 0)),
            pl.BlockSpec((tbh, N * GCN1_OUT), lambda b: (b, 0)),
            pl.BlockSpec((tbh, N * GCN2_OUT), lambda b: (b, 0)),
            pl.BlockSpec((N * IN_FEAT, HIDDEN), lambda b: (0, 0)),
            pl.BlockSpec((N * GCN1_OUT, HIDDEN), lambda b: (0, 0)),
            pl.BlockSpec((N * GCN2_OUT, HIDDEN), lambda b: (0, 0)),
            pl.BlockSpec((1, HIDDEN), lambda b: (0, 0)),
        ],
        out_specs=pl.BlockSpec((tbh, HIDDEN), lambda b: (b, 0)),
        compiler_params=pltpu.CompilerParams(dimension_semantics=("parallel",)),
    )
    h = head_call(xa, xb, xc, wa, wb, wc, params["b_mlp"])[:B]   # drop batch pad

    # ---- kernel 3: BatchNorm1d (training-mode batch stats) + classifier ----
    bn_call = pl.pallas_call(
        _bn_classifier_kernel,
        out_shape=jax.ShapeDtypeStruct((B, NCLASS), jnp.float32),
        grid=(1,),
        in_specs=[
            pl.BlockSpec((B, HIDDEN), lambda i: (0, 0)),
            pl.BlockSpec((1, HIDDEN), lambda i: (0, 0)),
            pl.BlockSpec((1, HIDDEN), lambda i: (0, 0)),
            pl.BlockSpec((HIDDEN, NCLASS), lambda i: (0, 0)),
            pl.BlockSpec((1, NCLASS), lambda i: (0, 0)),
        ],
        out_specs=pl.BlockSpec((B, NCLASS), lambda i: (0, 0)),
        compiler_params=pltpu.CompilerParams(dimension_semantics=("arbitrary",)),
    )
    out = bn_call(h, params["bn_gamma"], params["bn_beta"],
                  params["w_mlp2"], params["b_mlp2"])
    return out, laplacian[:B]


# --------------------------- deterministic params ----------------------------


def init_params(key):
    ks = jax.random.split(key, 8)

    def u(k, shape, fan_in):
        bound = 1.0 / (fan_in ** 0.5)
        return jax.random.uniform(k, shape, jnp.float32, -bound, bound)

    return dict(
        w_att=u(ks[0], (IN_FEAT, AUG_FEAT), IN_FEAT),        # GATLayer W
        a1=u(ks[1], (1, AUG_FEAT), AUG_FEAT),                # GATLayer a[:F']
        a2=u(ks[2], (1, AUG_FEAT), AUG_FEAT),                # GATLayer a[F':]
        w_gcn1=u(ks[3], (IN_FEAT, GCN1_OUT), IN_FEAT),       # GCNLayer(5,10)
        w_gcn2=u(ks[4], (GCN1_OUT, GCN2_OUT), GCN1_OUT),     # GCNLayer(10,15)
        w_mlp=u(ks[5], (N_NODES * CAT_FEAT, HIDDEN), N_NODES * CAT_FEAT),
        b_mlp=u(ks[6], (1, HIDDEN), N_NODES * CAT_FEAT),
        bn_gamma=jnp.ones((1, HIDDEN), jnp.float32),         # BatchNorm1d init
        bn_beta=jnp.zeros((1, HIDDEN), jnp.float32),
        w_mlp2=u(ks[7], (HIDDEN, NCLASS), HIDDEN),
        b_mlp2=jnp.zeros((1, NCLASS), jnp.float32),
    )


if __name__ == "__main__":
    key = jax.random.PRNGKey(0)
    k_adj, k_x, k_par = jax.random.split(key, 3)

    B = 8
    # Deterministic sparse symmetric adjacency (62x62, no self loops).
    uadj = jax.random.uniform(k_adj, (N_NODES, N_NODES))
    adj = (((uadj + uadj.T) * 0.5) > 0.92).astype(jnp.float32)
    adj = adj * (1.0 - jnp.eye(N_NODES, dtype=jnp.float32))
    lap_norm = normalize_adj(adj)

    x = jax.random.normal(k_x, (B, N_NODES, IN_FEAT), jnp.float32)
    params = init_params(k_par)

    # NOTE: nn.Dropout is constructed in __init__ but never applied in
    # GAAT.forward, so no dropout is performed here.
    logits, laplacian = gaat_forward(x, lap_norm, params)
    jax.block_until_ready((logits, laplacian))

    assert logits.shape == (B, NCLASS)
    assert laplacian.shape == (B, N_NODES, N_NODES)
    assert bool(jnp.all(jnp.isfinite(logits)))
    print("KERNEL_OK")
</pallas_src>

<mosaic_0001>
module attributes {stable_mosaic.version = 11 : i64} {
  func.func @_graph_kernel(%arg0: i32, %arg1: memref<4x62x5xf32, #tpu.memory_space<vmem>>, %arg2: memref<62x62xf32, #tpu.memory_space<vmem>>, %arg3: memref<5x8xf32, #tpu.memory_space<vmem>>, %arg4: memref<1x8xf32, #tpu.memory_space<vmem>>, %arg5: memref<1x8xf32, #tpu.memory_space<vmem>>, %arg6: memref<5x10xf32, #tpu.memory_space<vmem>>, %arg7: memref<10x15xf32, #tpu.memory_space<vmem>>, %arg8: memref<4x62x10xf32, #tpu.memory_space<vmem>>, %arg9: memref<4x62x15xf32, #tpu.memory_space<vmem>>, %arg10: memref<4x62x62xf32, #tpu.memory_space<vmem>>) attributes {dimension_semantics = [#tpu.dimension_semantics<parallel>], iteration_bounds = array<i64: 2>, scalar_prefetch = 0 : i64, scratch_operands = 0 : i64, tpu.core_type = #tpu.core_type<tc>, window_params = [{transform_indices = @transform_0, window_bounds = array<i64: 4, 62, 5>}, {pipeline_mode = #tpu.pipeline_mode<synchronous>, transform_indices = @transform_1, window_bounds = array<i64: 62, 62>}, {pipeline_mode = #tpu.pipeline_mode<synchronous>, transform_indices = @transform_2, window_bounds = array<i64: 5, 8>}, {pipeline_mode = #tpu.pipeline_mode<synchronous>, transform_indices = @transform_3, window_bounds = array<i64: 1, 8>}, {pipeline_mode = #tpu.pipeline_mode<synchronous>, transform_indices = @transform_4, window_bounds = array<i64: 1, 8>}, {pipeline_mode = #tpu.pipeline_mode<synchronous>, transform_indices = @transform_5, window_bounds = array<i64: 5, 10>}, {pipeline_mode = #tpu.pipeline_mode<synchronous>, transform_indices = @transform_6, window_bounds = array<i64: 10, 15>}, {transform_indices = @transform_7, window_bounds = array<i64: 4, 62, 10>}, {transform_indices = @transform_8, window_bounds = array<i64: 4, 62, 15>}, {transform_indices = @transform_9, window_bounds = array<i64: 4, 62, 62>}]} {
    %c0 = arith.constant 0 : index
    %c0_0 = arith.constant 0 : index
    %c0_1 = arith.constant 0 : index
    %0 = vector.load %arg1[%c0, %c0_0, %c0_1] : memref<4x62x5xf32, #tpu.memory_space<vmem>>, vector<4x62x5xf32>
    %c0_2 = arith.constant 0 : index
    %c0_3 = arith.constant 0 : index
    %1 = vector.load %arg2[%c0_2, %c0_3] : memref<62x62xf32, #tpu.memory_space<vmem>>, vector<62x62xf32>
    %c0_4 = arith.constant 0 : index
    %c0_5 = arith.constant 0 : index
    %2 = vector.load %arg3[%c0_4, %c0_5] : memref<5x8xf32, #tpu.memory_space<vmem>>, vector<5x8xf32>
    %3 = vector.shape_cast %2 : vector<5x8xf32> to vector<1x5x8xf32>
    %4 = vector.broadcast %3 : vector<1x5x8xf32> to vector<4x5x8xf32>
    "tpu.trace_start"() <{level = 10 : i32, message = "bnf,bfa->bna"}> : () -> ()
    %cst = arith.constant dense<0.000000e+00> : vector<4x62x8xf32>
    %5 = tpu.matmul %0, %4, %cst {dimension_numbers = #tpu.dot_dimension_numbers<[2], [1], [1], [2], [0, 0, 0, 1, 1, 2], [0], [0]>} : vector<4x62x5xf32>, vector<4x5x8xf32>, vector<4x62x8xf32> -> vector<4x62x8xf32>
    "tpu.trace_stop"() : () -> ()
    %c0_6 = arith.constant 0 : index
    %c0_7 = arith.constant 0 : index
    %6 = vector.load %arg4[%c0_6, %c0_7] : memref<1x8xf32, #tpu.memory_space<vmem>>, vector<1x8xf32>
    %7 = vector.shape_cast %6 : vector<1x8xf32> to vector<1x1x8xf32>
    %8 = vector.broadcast %7 : vector<1x1x8xf32> to vector<4x1x8xf32>
    %c0_8 = arith.constant 0 : index
    %c0_9 = arith.constant 0 : index
    %9 = vector.load %arg5[%c0_8, %c0_9] : memref<1x8xf32, #tpu.memory_space<vmem>>, vector<1x8xf32>
    %10 = vector.shape_cast %9 : vector<1x8xf32> to vector<1x1x8xf32>
    %11 = vector.broadcast %10 : vector<1x1x8xf32> to vector<4x1x8xf32>
    "tpu.trace_start"() <{level = 10 : i32, message = "bna,bka->bnk"}> : () -> ()
    %cst_10 = arith.constant dense<0.000000e+00> : vector<4x62x1xf32>
    %12 = tpu.matmul %5, %8, %cst_10 {dimension_numbers = #tpu.dot_dimension_numbers<[2], [2], [1], [1], [0, 0, 0, 1, 1, 1], [0], [0]>} : vector<4x62x8xf32>, vector<4x1x8xf32>, vector<4x62x1xf32> -> vector<4x62x1xf32>
    "tpu.trace_stop"() : () -> ()
    "tpu.trace_start"() <{level = 10 : i32, message = "bka,bna->bkn"}> : () -> ()
    %cst_11 = arith.constant dense<0.000000e+00> : vector<4x1x62xf32>
    %13 = tpu.matmul %11, %5, %cst_11 {dimension_numbers = #tpu.dot_dimension_numbers<[2], [2], [1], [1], [0, 0, 0, 1, 1, 1], [0], [0]>} : vector<4x1x8xf32>, vector<4x62x8xf32>, vector<4x1x62xf32> -> vector<4x1x62xf32>
    "tpu.trace_stop"() : () -> ()
    %14 = vector.broadcast %12 : vector<4x62x1xf32> to vector<4x62x62xf32>
    %15 = vector.broadcast %13 : vector<4x1x62xf32> to vector<4x62x62xf32>
    %16 = arith.addf %14, %15 : vector<4x62x62xf32>
    %cst_12 = arith.constant 0.000000e+00 : f32
    %17 = vector.broadcast %cst_12 : f32 to vector<4x62x62xf32>
    %18 = arith.cmpf ogt, %16, %17 : vector<4x62x62xf32>
    %cst_13 = arith.constant 2.000000e-01 : f32
    %19 = vector.broadcast %cst_13 : f32 to vector<4x62x62xf32>
    %20 = arith.mulf %19, %16 : vector<4x62x62xf32>
    %21 = arith.select %18, %16, %20 : vector<4x62x62xi1>, vector<4x62x62xf32>
    %cst_14 = arith.constant 1.000000e-01 : f32
    %22 = vector.broadcast %cst_14 : f32 to vector<62x62xf32>
    %23 = arith.cmpf ogt, %1, %22 : vector<62x62xf32>
    %24 = vector.shape_cast %23 : vector<62x62xi1> to vector<1x62x62xi1>
    %cst_15 = arith.constant -9.000000e+15 : f32
    %25 = vector.broadcast %cst_15 : f32 to vector<4x62x62xf32>
    %26 = vector.shape_cast %24 : vector<1x62x62xi1> to vector<1x62x62xi1>
    %27 = vector.broadcast %26 : vector<1x62x62xi1> to vector<4x62x62xi1>
    %28 = arith.select %27, %21, %25 : vector<4x62x62xi1>, vector<4x62x62xf32>
    %cst_16 = arith.constant dense<0xFF800000> : vector<4x62xf32>
    %29 = vector.multi_reduction <maximumf>, %28, %cst_16 [1] : vector<4x62x62xf32> to vector<4x62xf32>
    %30 = vector.shape_cast %29 : vector<4x62xf32> to vector<4x1x62xf32>
    %31 = vector.broadcast %30 : vector<4x1x62xf32> to vector<4x62x62xf32>
    %32 = arith.subf %28, %31 : vector<4x62x62xf32>
    %33 = math.exp %32 : vector<4x62x62xf32>
    %cst_17 = arith.constant dense<0.000000e+00> : vector<4x62xf32>
    %34 = vector.multi_reduction <add>, %33, %cst_17 [1] : vector<4x62x62xf32> to vector<4x62xf32>
    %35 = vector.shape_cast %34 : vector<4x62xf32> to vector<4x1x62xf32>
    %36 = tpu.reciprocal %35 {approx = true} : vector<4x1x62xf32> -> vector<4x1x62xf32>
    %37 = vector.broadcast %36 : vector<4x1x62xf32> to vector<4x62x62xf32>
    %38 = arith.mulf %33, %37 : vector<4x62x62xf32>
    %39 = vector.shape_cast %1 : vector<62x62xf32> to vector<1x62x62xf32>
    %cst_18 = arith.constant 8.000000e-01 : f32
    %40 = vector.broadcast %cst_18 : f32 to vector<1x62x62xf32>
    %41 = arith.mulf %39, %40 : vector<1x62x62xf32>
    %cst_19 = arith.constant 2.000000e-01 : f32
    %42 = vector.broadcast %cst_19 : f32 to vector<4x62x62xf32>
    %43 = arith.mulf %38, %42 : vector<4x62x62xf32>
    %44 = vector.broadcast %41 : vector<1x62x62xf32> to vector<4x62x62xf32>
    %45 = arith.addf %44, %43 : vector<4x62x62xf32>
    %c0_20 = arith.constant 0 : index
    %c0_21 = arith.constant 0 : index
    %c0_22 = arith.constant 0 : index
    %46 = vector.load %arg10[%c0_20, %c0_21, %c0_22] : memref<4x62x62xf32, #tpu.memory_space<vmem>>, vector<4x62x62xf32>
    tpu.vector_store %arg10[%c0_20, %c0_21, %c0_22], %45 {strides = array<i32>} : memref<4x62x62xf32, #tpu.memory_space<vmem>>, vector<4x62x62xf32>,
    %c0_23 = arith.constant 0 : index
    %c0_24 = arith.constant 0 : index
    %47 = vector.load %arg6[%c0_23, %c0_24] : memref<5x10xf32, #tpu.memory_space<vmem>>, vector<5x10xf32>
    %48 = vector.shape_cast %47 : vector<5x10xf32> to vector<1x5x10xf32>
    %49 = vector.broadcast %48 : vector<1x5x10xf32> to vector<4x5x10xf32>
    %c0_25 = arith.constant 0 : index
    %c0_26 = arith.constant 0 : index
    %50 = vector.load %arg7[%c0_25, %c0_26] : memref<10x15xf32, #tpu.memory_space<vmem>>, vector<10x15xf32>
    %51 = vector.shape_cast %50 : vector<10x15xf32> to vector<1x10x15xf32>
    %52 = vector.broadcast %51 : vector<1x10x15xf32> to vector<4x10x15xf32>
    "tpu.trace_start"() <{level = 10 : i32, message = "bnf,bfk->bnk"}> : () -> ()
    %cst_27 = arith.constant dense<0.000000e+00> : vector<4x62x10xf32>
    %53 = tpu.matmul %0, %49, %cst_27 {dimension_numbers = #tpu.dot_dimension_numbers<[2], [1], [1], [2], [0, 0, 0, 1, 1, 2], [0], [0]>} : vector<4x62x5xf32>, vector<4x5x10xf32>, vector<4x62x10xf32> -> vector<4x62x10xf32>
    "tpu.trace_stop"() : () -> ()
    "tpu.trace_start"() <{level = 10 : i32, message = "bij,bjk->bik"}> : () -> ()
    %cst_28 = arith.constant dense<0.000000e+00> : vector<4x62x10xf32>
    %54 = tpu.matmul %45, %53, %cst_28 {dimension_numbers = #tpu.dot_dimension_numbers<[2], [1], [1], [2], [0, 0, 0, 1, 1, 2], [0], [0]>} : vector<4x62x62xf32>, vector<4x62x10xf32>, vector<4x62x10xf32> -> vector<4x62x10xf32>
    %cst_29 = arith.constant 0.000000e+00 : f32
    "tpu.trace_stop"() : () -> ()
    %55 = vector.broadcast %cst_29 : f32 to vector<4x62x10xf32>
    %56 = arith.cmpf ogt, %54, %55 : vector<4x62x10xf32>
    %cst_30 = arith.constant 2.000000e-01 : f32
    %57 = vector.broadcast %cst_30 : f32 to vector<4x62x10xf32>
    %58 = arith.mulf %57, %54 : vector<4x62x10xf32>
    %59 = arith.select %56, %54, %58 : vector<4x62x10xi1>, vector<4x62x10xf32>
    %c0_31 = arith.constant 0 : index
    %c0_32 = arith.constant 0 : index
    %c0_33 = arith.constant 0 : index
    %60 = vector.load %arg8[%c0_31, %c0_32, %c0_33] : memref<4x62x10xf32, #tpu.memory_space<vmem>>, vector<4x62x10xf32>
    tpu.vector_store %arg8[%c0_31, %c0_32, %c0_33], %59 {strides = array<i32>} : memref<4x62x10xf32, #tpu.memory_space<vmem>>, vector<4x62x10xf32>,
    "tpu.trace_start"() <{level = 10 : i32, message = "bnf,bfk->bnk"}> : () -> ()
    %cst_34 = arith.constant dense<0.000000e+00> : vector<4x62x15xf32>
    %61 = tpu.matmul %59, %52, %cst_34 {dimension_numbers = #tpu.dot_dimension_numbers<[2], [1], [1], [2], [0, 0, 0, 1, 1, 2], [0], [0]>} : vector<4x62x10xf32>, vector<4x10x15xf32>, vector<4x62x15xf32> -> vector<4x62x15xf32>
    "tpu.trace_stop"() : () -> ()
    "tpu.trace_start"() <{level = 10 : i32, message = "bij,bjk->bik"}> : () -> ()
    %cst_35 = arith.constant dense<0.000000e+00> : vector<4x62x15xf32>
    %62 = tpu.matmul %45, %61, %cst_35 {dimension_numbers = #tpu.dot_dimension_numbers<[2], [1], [1], [2], [0, 0, 0, 1, 1, 2], [0], [0]>} : vector<4x62x62xf32>, vector<4x62x15xf32>, vector<4x62x15xf32> -> vector<4x62x15xf32>
    %cst_36 = arith.constant 0.000000e+00 : f32
    "tpu.trace_stop"() : () -> ()
    %63 = vector.broadcast %cst_36 : f32 to vector<4x62x15xf32>
    %64 = arith.cmpf ogt, %62, %63 : vector<4x62x15xf32>
    %cst_37 = arith.constant 2.000000e-01 : f32
    %65 = vector.broadcast %cst_37 : f32 to vector<4x62x15xf32>
    %66 = arith.mulf %65, %62 : vector<4x62x15xf32>
    %67 = arith.select %64, %62, %66 : vector<4x62x15xi1>, vector<4x62x15xf32>
    %c0_38 = arith.constant 0 : index
    %c0_39 = arith.constant 0 : index
    %c0_40 = arith.constant 0 : index
    %68 = vector.load %arg9[%c0_38, %c0_39, %c0_40] : memref<4x62x15xf32, #tpu.memory_space<vmem>>, vector<4x62x15xf32>
    tpu.vector_store %arg9[%c0_38, %c0_39, %c0_40], %67 {strides = array<i32>} : memref<4x62x15xf32, #tpu.memory_space<vmem>>, vector<4x62x15xf32>,
    return
  }
  func.func @transform_0(%arg0: i32) -> (i32, i32, i32) {
    %c0_i32 = arith.constant 0 : i32
    %c0_i32_0 = arith.constant 0 : i32
    %c0_i32_1 = arith.constant 0 : i32
    return %arg0, %c0_i32, %c0_i32_0 : i32, i32, i32
  }
  func.func @transform_1(%arg0: i32) -> (i32, i32) {
    %c0_i32 = arith.constant 0 : i32
    %c0_i32_0 = arith.constant 0 : i32
    %c0_i32_1 = arith.constant 0 : i32
    return %c0_i32, %c0_i32_0 : i32, i32
  }
  func.func @transform_2(%arg0: i32) -> (i32, i32) {
    %c0_i32 = arith.constant 0 : i32
    %c0_i32_0 = arith.constant 0 : i32
    %c0_i32_1 = arith.constant 0 : i32
    return %c0_i32, %c0_i32_0 : i32, i32
  }
  func.func @transform_3(%arg0: i32) -> (i32, i32) {
    %c0_i32 = arith.constant 0 : i32
    %c0_i32_0 = arith.constant 0 : i32
    %c0_i32_1 = arith.constant 0 : i32
    return %c0_i32, %c0_i32_0 : i32, i32
  }
  func.func @transform_4(%arg0: i32) -> (i32, i32) {
    %c0_i32 = arith.constant 0 : i32
    %c0_i32_0 = arith.constant 0 : i32
    %c0_i32_1 = arith.constant 0 : i32
    return %c0_i32, %c0_i32_0 : i32, i32
  }
  func.func @transform_5(%arg0: i32) -> (i32, i32) {
    %c0_i32 = arith.constant 0 : i32
    %c0_i32_0 = arith.constant 0 : i32
    %c0_i32_1 = arith.constant 0 : i32
    return %c0_i32, %c0_i32_0 : i32, i32
  }
  func.func @transform_6(%arg0: i32) -> (i32, i32) {
    %c0_i32 = arith.constant 0 : i32
    %c0_i32_0 = arith.constant 0 : i32
    %c0_i32_1 = arith.constant 0 : i32
    return %c0_i32, %c0_i32_0 : i32, i32
  }
  func.func @transform_7(%arg0: i32) -> (i32, i32, i32) {
    %c0_i32 = arith.constant 0 : i32
    %c0_i32_0 = arith.constant 0 : i32
    %c0_i32_1 = arith.constant 0 : i32
    return %arg0, %c0_i32, %c0_i32_0 : i32, i32, i32
  }
  func.func @transform_8(%arg0: i32) -> (i32, i32, i32) {
    %c0_i32 = arith.constant 0 : i32
    %c0_i32_0 = arith.constant 0 : i32
    %c0_i32_1 = arith.constant 0 : i32
    return %arg0, %c0_i32, %c0_i32_0 : i32, i32, i32
  }
  func.func @transform_9(%arg0: i32) -> (i32, i32, i32) {
    %c0_i32 = arith.constant 0 : i32
    %c0_i32_0 = arith.constant 0 : i32
    %c0_i32_1 = arith.constant 0 : i32
    return %arg0, %c0_i32, %c0_i32_0 : i32, i32, i32
  }
}

</mosaic_0001>

<bundles_post_ra>
// kernel: tpu_custom_call.1
= control target key start
LH: loop header
LB: loop body
LE: loop exit
PB: predicated region body
PF: predicated region fallthrough
CT: control target
= control target key end

     0   :  { %s3404_s30 = smov 0   ;;  %s5096_s0 = inlined_call_operand.vmem [shape: f32[8,62,5], index: 0, kind: input, shape index: {}]   ;;  %s5097_s1 = inlined_call_operand.vmem [shape: f32[62,62], index: 1, kind: input, shape index: {}]   ;;  %s5098_s2 = inlined_call_operand.vmem [shape: f32[5,8], index: 2, kind: input, shape index: {}]   ;;  %s5099_s3 = inlined_call_operand.vmem [shape: f32[1,8], index: 3, kind: input, shape index: {}]   ;;  %s5100_s4 = inlined_call_operand.vmem [shape: f32[1,8], index: 4, kind: input, shape index: {}]   ;;  %s5101_s5 = inlined_call_operand.vmem [shape: f32[5,10], index: 5, kind: input, shape index: {}]   ;;  %s5102_s6 = inlined_call_operand.vmem [shape: f32[10,15], index: 6, kind: input, shape index: {}]   ;;  %s5103_s7 = inlined_call_operand.vmem [shape: f32[8,62,10], index: 7, kind: output, shape index: {0}]   ;;  %s5104_s8 = inlined_call_operand.vmem [shape: f32[8,62,15], index: 8, kind: output, shape index: {1}]   ;;  %s5105_s9 = inlined_call_operand.vmem [shape: f32[8,62,62], index: 9, kind: output, shape index: {2}]  }
   0x1 LB: > { %s3019_s10 = sadd.s32 4294967295, %s3351_s30   ;;  %p3023_p0 = scmp.ge.s32.totalorder %s3351_s30, 1  ;;  %s3351_s30 = sphi %s3404_s30, %s20_s30  }
   0x2   : > { %p294_p1 = scmp.lt.s32.totalorder %s3351_s30, 3 }
   0x4   : > { %p295_p2 = pnand %p3023_p0, %p294_p1 }
   0x6   : > { %298 = sbr.rel (%p295_p2) target bundleno = 1087 (0x43f), region = 48 }
   0xb   : > { %v412_v0 = vld [vmem:[%s5098_s2] sm:$0x1f]  ;;  %vm438_vm0 = vcmask 1044480   ;;  %s3024_s13 = sshll.u32 %s3019_s10, 2  ;;  %vm413_vm1 = vcmask 39936   ;;  %vm691_vm2 = vcmask 64512  }
   0xc   : > { %3036 = vmatpush.msk.msra.mxu0 %vm438_vm0, %v412_v0  ;;  %3045 = vmatpush.msk.msra.mxu1 %vm438_vm0, %v412_v0  ;;  %p345_p3 = scmp.lt.s32.totalorder %s3024_s13, 7  ;;  %v3590_v33 = vld [vmem:[%s5099_s3] ss:$0 sm:$0xff]  ;;  %vm713_vm3 = vcmask 62464   ;;  %vm1340_vm9 = vcmask 506880  }
   0xd   : > { %3054 = vmatpush.msk.msra.mxu2 %vm438_vm0, %v412_v0  ;;  %3063 = vmatpush.msk.msra.mxu3 %vm438_vm0, %v412_v0 }
   0xe   : > { %s5158_s13 = smov (!%p345_p3, %s3024_s13), 7 }
   0xf   : > { %s3419_s14 = sshll.u32 %s5158_s13, 6 }
  0x10   : > { %s3425_s17 = scalar_lea.vmem %s5096_s0, %s3419_s14  ;;  %s4535_s27 = scalar_lea.vmem %s5105_s9, %s3419_s14 }
  0x11   : > { %v3428_v1 = vld [vmem:[%s3425_s17] sm:$0xff]  ;;  %v3448_v5 = vld [vmem:[%s3425_s17 + $0x8] sm:$0xff]  ;;  %v3468_v9 = vld [vmem:[%s3425_s17 + $0x10] sm:$0xff]  ;;  %s4814_s15 = scalar_lea.vmem %s5103_s7, %s3419_s14  ;;  %s5027_s18 = scalar_lea.vmem %s5104_s8, %s3419_s14 }
  0x12   : > { %v3431_v2 = vld [vmem:[%s3425_s17 + $0x40] sm:$0xff]  ;;  %3037 = vmatmul.msk.f32.vlgmr.msra.gmra.mxu0 %vm413_vm1, %v3428_v1  ;;  %v3451_v6 = vld [vmem:[%s3425_s17 + $0x48] sm:$0xff]  ;;  %v3471_v10 = vld [vmem:[%s3425_s17 + $0x50] sm:$0xff] }
  0x13   : > { %v3434_v3 = vld [vmem:[%s3425_s17 + $0x80] sm:$0xff]  ;;  %3046 = vmatmul.msk.f32.vlgmr.msra.gmra.mxu1 %vm413_vm1, %v3431_v2  ;;  %v3454_v7 = vld [vmem:[%s3425_s17 + $0x88] sm:$0xff]  ;;  %v3474_v11 = vld [vmem:[%s3425_s17 + $0x90] sm:$0xff] }
  0x14   : > { %v3441_v4 = vld [vmem:[%s3425_s17 + $0xc0] sm:$0xff]  ;;  %3055 = vmatmul.msk.f32.vlgmr.msra.gmra.mxu2 %vm413_vm1, %v3434_v3  ;;  %v3457_v8 = vld [vmem:[%s3425_s17 + $0xc8] sm:$0xff]  ;;  %v3477_v12 = vld [vmem:[%s3425_s17 + $0xd0] sm:$0xff] }
  0x15   : > { %3064 = vmatmul.msk.f32.vlgmr.msra.gmra.mxu3 %vm413_vm1, %v3441_v4  ;;  %v3488_v13 = vld [vmem:[%s3425_s17 + $0x18] sm:$0xff]  ;;  %v3508_v17 = vld [vmem:[%s3425_s17 + $0x20] sm:$0xff]  ;;  %v3528_v21 = vld [vmem:[%s3425_s17 + $0x28] sm:$0xff] }
  0x16   : > { %v3491_v14 = vld [vmem:[%s3425_s17 + $0x58] sm:$0xff]  ;;  %v3511_v18 = vld [vmem:[%s3425_s17 + $0x60] sm:$0xff]  ;;  %v3531_v22 = vld [vmem:[%s3425_s17 + $0x68] sm:$0xff] }
  0x17   : > { %v3494_v15 = vld [vmem:[%s3425_s17 + $0x98] sm:$0xff]  ;;  %v3514_v19 = vld [vmem:[%s3425_s17 + $0xa0] sm:$0xff]  ;;  %v3534_v23 = vld [vmem:[%s3425_s17 + $0xa8] sm:$0xff] }
  0x18   : > { %v3497_v16 = vld [vmem:[%s3425_s17 + $0xd8] sm:$0xff]  ;;  %v3517_v20 = vld [vmem:[%s3425_s17 + $0xe0] sm:$0xff]  ;;  %5121 = vst [vmem:[#allocation2_spill] sm:$0xff] %v3534_v23  ;;  %v3537_v24 = vld [vmem:[%s3425_s17 + $0xe8] sm:$0xff] }
  0x19   : > { %5122 = vst [vmem:[#allocation3_spill] sm:$0xff] %v3537_v24  ;;  %v3548_v25 = vld [vmem:[%s3425_s17 + $0x30] sm:$0xff]  ;;  %v3568_v29 = vld [vmem:[%s3425_s17 + $0x38] sm:$0x3f] }
  0x1a   : > { %3038 = vmatmul.msk.f32.gmra.mxu0 %vm413_vm1, %v3448_v5  ;;  %5123 = vst [vmem:[#allocation4_spill] sm:$0xff] %v3548_v25  ;;  %v3551_v26 = vld [vmem:[%s3425_s17 + $0x70] sm:$0xff]  ;;  %v3571_v30 = vld [vmem:[%s3425_s17 + $0x78] sm:$0x3f] }
  0x1b   : > { %3047 = vmatmul.msk.f32.gmra.mxu1 %vm413_vm1, %v3451_v6  ;;  %5124 = vst [vmem:[#allocation5_spill] sm:$0xff] %v3551_v26  ;;  %v3554_v27 = vld [vmem:[%s3425_s17 + $0xb0] sm:$0xff]  ;;  %v3574_v31 = vld [vmem:[%s3425_s17 + $0xb8] sm:$0x3f] }
  0x1c   : > { %3056 = vmatmul.msk.f32.gmra.mxu2 %vm413_vm1, %v3454_v7  ;;  %5125 = vst [vmem:[#allocation6_spill] sm:$0xff] %v3554_v27  ;;  %v3557_v28 = vld [vmem:[%s3425_s17 + $0xf0] sm:$0xff]  ;;  %v3577_v32 = vld [vmem:[%s3425_s17 + $0xf8] sm:$0x3f] }
  0x1d   : > { %3065 = vmatmul.msk.f32.gmra.mxu3 %vm413_vm1, %v3457_v8  ;;  %5126 = vst [vmem:[#allocation7_spill] sm:$0xff] %v3557_v28 }
  0x1e   : > { %5127 = vst [vmem:[#allocation8_spill] sm:$0xff] %v3568_v29 }
  0x1f   : > { %5128 = vst [vmem:[#allocation9_spill] sm:$0xff] %v3571_v30 }
  0x20   : > { %5129 = vst [vmem:[#allocation10_spill] sm:$0xff] %v3574_v31 }
  0x21   : > { %5130 = vst [vmem:[#allocation11_spill] sm:$0xff] %v3577_v32 }
  0x22   : > { %3039 = vmatmul.msk.f32.gmra.mxu0 %vm413_vm1, %v3468_v9 }
  0x23   : > { %3048 = vmatmul.msk.f32.gmra.mxu1 %vm413_vm1, %v3471_v10 }
  0x24   : > { %3057 = vmatmul.msk.f32.gmra.mxu2 %vm413_vm1, %v3474_v11 }
  0x25   : > { %3066 = vmatmul.msk.f32.gmra.mxu3 %vm413_vm1, %v3477_v12 }
  0x2a   : > { %3040 = vmatmul.msk.f32.gmra.mxu0 %vm413_vm1, %v3488_v13 }
  0x2b   : > { %3049 = vmatmul.msk.f32.gmra.mxu1 %vm413_vm1, %v3491_v14 }
  0x2c   : > { %3058 = vmatmul.msk.f32.gmra.mxu2 %vm413_vm1, %v3494_v15 }
  0x2d   : > { %3067 = vmatmul.msk.f32.gmra.mxu3 %vm413_vm1, %v3497_v16 }
  0x32   : > { %3041 = vmatmul.msk.f32.gmra.mxu0 %vm413_vm1, %v3508_v17 }
  0x33   : > { %3050 = vmatmul.msk.f32.gmra.mxu1 %vm413_vm1, %v3511_v18 }
  0x34   : > { %3059 = vmatmul.msk.f32.gmra.mxu2 %vm413_vm1, %v3514_v19 }
  0x35   : > { %3068 = vmatmul.msk.f32.gmra.mxu3 %vm413_vm1, %v3517_v20 }
  0x3a   : > { %3042 = vmatmul.msk.f32.gmra.mxu0 %vm413_vm1, %v3528_v21 }
  0x3b   : > { %3051 = vmatmul.msk.f32.gmra.mxu1 %vm413_vm1, %v3531_v22 }
  0x3c   : > { %3060 = vmatmul.msk.f32.gmra.mxu2 %vm413_vm1, %v3534_v23 }
  0x3d   : > { %3069 = vmatmul.msk.f32.gmra.mxu3 %vm413_vm1, %v3537_v24 }
  0x42   : > { %3043 = vmatmul.msk.f32.gmra.mxu0 %vm413_vm1, %v3548_v25 }
  0x43   : > { %3052 = vmatmul.msk.f32.gmra.mxu1 %vm413_vm1, %v3551_v26 }
  0x44   : > { %3061 = vmatmul.msk.f32.gmra.mxu2 %vm413_vm1, %v3554_v27 }
  0x45   : > { %3070 = vmatmul.msk.f32.gmra.mxu3 %vm413_vm1, %v3557_v28 }
  0x4a   : > { %3044 = vmatmul.msk.f32.gmra.mxu0 %vm413_vm1, %v3568_v29 }
  0x4b   : > { %3053 = vmatmul.msk.f32.gmra.mxu1 %vm413_vm1, %v3571_v30 }
  0x4c   : > { %3062 = vmatmul.msk.f32.gmra.mxu2 %vm413_vm1, %v3574_v31 }
  0x4d   : > { %3071 = vmatmul.msk.f32.gmra.mxu3 %vm413_vm1, %v3577_v32 }
  0x8f   : > { %v3592_v34 = vpop.f32.mrf.mxu0 }
  0x90   : > { %v3594_v35 = vpop.f32.mrf.mxu1  ;;  %v683_v37 = vmul.f32 %v3590_v33, %v3592_v34 }
  0x91   : > { %v717_v36 = vmul.f32 %v3590_v33, %v3594_v35 }
  0x92   : > { %v692_v39 = vsel %vm691_vm2, %v683_v37, 0.0 }
  0x93   : > { %v725_v38 = vsel %vm691_vm2, %v717_v36, 0.0  ;;  %693 = vadd.xlane.f32.xlu1 %v692_v39 }
  0x94   : > { %726 = vadd.xlane.f32.xlu0 %v725_v38 }
  0x97   : > { %v3602_v40 = vpop.f32.mrf.mxu2  ;;  %v3606_v42 = vpop.f32.mrf.mxu0 }
  0x98   : > { %v3604_v41 = vpop.f32.mrf.mxu3  ;;  %v3608_v43 = vpop.f32.mrf.mxu1  ;;  %v749_v44 = vmul.f32 %v3590_v33, %v3602_v40  ;;  %v684_v46 = vmul.f32 %v3590_v33, %v3606_v42 }
  0x99   : > { %v781_v45 = vmul.f32 %v3590_v33, %v3604_v41  ;;  %v718_v50 = vmul.f32 %v3590_v33, %v3608_v43 }
  0x9a   : > { %v757_v47 = vsel %vm691_vm2, %v749_v44, 0.0  ;;  %v695_v49 = vsel %vm691_vm2, %v684_v46, 0.0 }
  0x9b   : > { %v789_v48 = vsel %vm691_vm2, %v781_v45, 0.0  ;;  %696 = vadd.xlane.f32.xlu2 %v695_v49  ;;  %v728_v56 = vsel %vm691_vm2, %v718_v50, 0.0 }
  0x9c   : > { %758 = vadd.xlane.f32.xlu0 %v757_v47  ;;  %790 = vadd.xlane.f32.xlu1 %v789_v48 }
  0x9f   : > { %v3621_v51 = vpop.f32.mrf.mxu2  ;;  %v3625_v53 = vpop.f32.mrf.mxu0 }
  0xa0   : > { %v3623_v52 = vpop.f32.mrf.mxu3  ;;  %v3627_v54 = vpop.f32.mrf.mxu1  ;;  %v750_v55 = vmul.f32 %v3590_v33, %v3621_v51  ;;  %v685_v57 = vmul.f32 %v3590_v33, %v3625_v53 }
  0xa1   : > { %v719_v60 = vmul.f32 %v3590_v33, %v3627_v54  ;;  %v782_v61 = vmul.f32 %v3590_v33, %v3623_v52 }
  0xa2   : > { %v760_v58 = vsel %vm691_vm2, %v750_v55, 0.0  ;;  %v698_v59 = vsel %vm691_vm2, %v685_v57, 0.0 }
  0xa3   : > { %699 = vadd.xlane.f32.xlu2 %v698_v59  ;;  %v731_v38 = vsel %vm691_vm2, %v719_v60, 0.0  ;;  %v792_v39 = vsel %vm691_vm2, %v782_v61, 0.0 }
  0xa4   : > { %761 = vadd.xlane.f32.xlu0 %v760_v58  ;;  %729 = vadd.xlane.f32.xlu1 %v728_v56 }
  0xa7   : > { %v3640_v62 = vpop.f32.mrf.mxu2  ;;  %v3644_v0 = vpop.f32.mrf.mxu0 }
  0xa8   : > { %v3642_v63 = vpop.f32.mrf.mxu3  ;;  %v3646_v36 = vpop.f32.mrf.mxu1  ;;  %v751_v37 = vmul.f32 %v3590_v33, %v3640_v62  ;;  %v686_v45 = vmul.f32 %v3590_v33, %v3644_v0 }
  0xa9   : > { %v783_v46 = vmul.f32 %v3590_v33, %v3642_v63  ;;  %v720_v61 = vmul.f32 %v3590_v33, %v3646_v36 }
  0xaa   : > { %v763_v44 = vsel %vm691_vm2, %v751_v37, 0.0  ;;  %v701_v56 = vsel %vm691_vm2, %v686_v45, 0.0 }
  0xab   : > { %764 = vadd.xlane.f32.xlu2 %v763_v44  ;;  %v795_v58 = vsel %vm691_vm2, %v783_v46, 0.0 }
  0xac   : > { %732 = vadd.xlane.f32.xlu0 %v731_v38  ;;  %793 = vadd.xlane.f32.xlu1 %v792_v39 }
  0xaf   : > { %v3657_v47 = vpop.f32.mrf.mxu2  ;;  %v3661_v49 = vpop.f32.mrf.mxu0 }
  0xb0   : > { %v3659_v48 = vpop.f32.mrf.mxu3  ;;  %v3663_v50 = vpop.f32.mrf.mxu1  ;;  %v752_v55 = vmul.f32 %v3590_v33, %v3657_v47  ;;  %v687_v60 = vmul.f32 %v3590_v33, %v3661_v49 }
  0xb1   : > { %v784_v59 = vmul.f32 %v3590_v33, %v3659_v48 }
  0xb2   : > { %v766_v57 = vsel %vm691_vm2, %v752_v55, 0.0  ;;  %v704_v46 = vsel %vm691_vm2, %v687_v60, 0.0  ;;  %v734_v55 = vsel %vm691_vm2, %v720_v61, 0.0 }
  0xb3   : > { %796 = vadd.xlane.f32.xlu2 %v795_v58  ;;  %v798_v45 = vsel %vm691_vm2, %v784_v59, 0.0 }
  0xb4   : > { %767 = vadd.xlane.f32.xlu0 %v766_v57  ;;  %702 = vadd.xlane.f32.xlu1 %v701_v56  ;;  %v721_v56 = vmul.f32 %v3590_v33, %v3663_v50 }
  0xb6   : > { %v737_v60 = vsel %vm691_vm2, %v721_v56, 0.0 }
  0xb7   : > { %v3676_v37 = vpop.f32.mrf.mxu2  ;;  %v474_v39 = vpop.f32.mrf.mxu0 }
  0xb8   : > { %v3678_v38 = vpop.f32.mrf.mxu3  ;;  %v539_v44 = vpop.f32.mrf.mxu1  ;;  %v753_v58 = vmul.f32 %v3590_v33, %v3676_v37  ;;  %v688_v29 = vmul.f32 %v3590_v33, %v474_v39 }
  0xb9   : > { %v785_v57 = vmul.f32 %v3590_v33, %v3678_v38 }
  0xbb   : > { %735 = vadd.xlane.f32.xlu2 %v734_v55  ;;  %v801_v61 = vsel %vm691_vm2, %v785_v57, 0.0  ;;  %v722_v55 = vmul.f32 %v3590_v33, %v539_v44 }
  0xbc   : > { %799 = vadd.xlane.f32.xlu1 %v798_v45  ;;  %705 = vadd.xlane.f32.xlu0 %v704_v46  ;;  %v769_v45 = vsel %vm691_vm2, %v753_v58, 0.0  ;;  %v707_v58 = vsel %vm691_vm2, %v688_v29, 0.0 }
  0xbd   : > { %v740_v57 = vsel %vm691_vm2, %v722_v55, 0.0 }
  0xbf   : > { %v604_v32 = vpop.f32.mrf.mxu2  ;;  %v477_v30 = vpop.f32.mrf.mxu0 }
  0xc0   : > { %v669_v31 = vpop.f32.mrf.mxu3  ;;  %v542_v59 = vpop.f32.mrf.mxu1  ;;  %v754_v46 = vmul.f32 %v3590_v33, %v604_v32  ;;  %v689_v23 = vmul.f32 %v3590_v33, %v477_v30 }
  0xc2   : > { %v772_v56 = vsel %vm691_vm2, %v754_v46, 0.0  ;;  %v710_v55 = vsel %vm691_vm2, %v689_v23, 0.0  ;;  %v3353_v23 = vmov 0  }
  0xc3   : > { %770 = vadd.xlane.f32.xlu2 %v769_v45  ;;  %3267 = vset.pattern.permute.xlu1 %v3353_v23 }
  0xc4   : > { %738 = vadd.xlane.f32.xlu1 %v737_v60  ;;  %802 = vadd.xlane.f32.xlu0 %v801_v61  ;;  %v786_v61 = vmul.f32 %v3590_v33, %v669_v31 }
  0xc5   : > { %3268 = vset.pattern.permute.xlu2 %v3353_v23  ;;  %3269 = vset.pattern.permute.xlu0 %v3353_v23 }
  0xc6   : > { %v804_v46 = vsel %vm691_vm2, %v786_v61, 0.0 }
  0xc7   : > { %v607_v28 = vpop.f32.mrf.mxu2  ;;  %v480_v26 = vpop.f32.mrf.mxu0 }
  0xc8   : > { %v672_v27 = vpop.f32.mrf.mxu3  ;;  %v545_v25 = vpop.f32.mrf.mxu1  ;;  %3072 = vmatpush.xpose.msk.msrb.mxu0 %vm691_vm2, %v480_v26  ;;  %v755_v60 = vmul.f32 %v3590_v33, %v607_v28 }
  0xc9   : > { %3081 = vmatpush.xpose.msk.msrb.mxu1 %vm691_vm2, %v545_v25 }
  0xca   : > { %v775_v29 = vsel %vm691_vm2, %v755_v60, 0.0 }
  0xcb   : > { %708 = vadd.xlane.f32.xlu2 %v707_v58 }
  0xcc   : > { %773 = vadd.xlane.f32.xlu1 %v772_v56  ;;  %741 = vadd.xlane.f32.xlu0 %v740_v57 }
  0xcd   : > { %3073 = vmatpush.xpose.msk.msrb.mxu0 %vm691_vm2, %v477_v30  ;;  %3082 = vmatpush.xpose.msk.msrb.mxu1 %vm691_vm2, %v542_v59  ;;  %v723_v30 = vmul.f32 %v3590_v33, %v542_v59 }
  0xcf   : > { %v610_v45 = vpop.f32.mrf.mxu2 }
  0xd0   : > { %v675_v24 = vpop.f32.mrf.mxu3  ;;  %3090 = vmatpush.xpose.msk.msrb.mxu2 %vm691_vm2, %v610_v45 }
  0xd1   : > { %3099 = vmatpush.xpose.msk.msrb.mxu3 %vm691_vm2, %v675_v24  ;;  %3074 = vmatpush.xpose.msk.msrb.mxu0 %vm691_vm2, %v474_v39  ;;  %v690_v39 = vmul.f32 %v3590_v33, %v480_v26 }
  0xd2   : > { %3083 = vmatpush.xpose.msk.msrb.mxu1 %vm691_vm2, %v539_v44  ;;  %v787_v44 = vmul.f32 %v3590_v33, %v672_v27 }
  0xd3   : > { %805 = vadd.xlane.f32.xlu2 %v804_v46  ;;  %v714_v26 = vsel %vm713_vm3, %v690_v39, 0.0 }
  0xd4   : > { %3091 = vmatpush.xpose.msk.msrb.mxu2 %vm691_vm2, %v607_v28  ;;  %776 = vadd.xlane.f32.xlu0 %v775_v29  ;;  %v743_v28 = vsel %vm691_vm2, %v723_v30, 0.0 }
  0xd5   : > { %3100 = vmatpush.xpose.msk.msrb.mxu3 %vm691_vm2, %v672_v27  ;;  %711 = vadd.xlane.f32.xlu1 %v710_v55  ;;  %v807_v27 = vsel %vm691_vm2, %v787_v44, 0.0 }
  0xd6   : > { %3075 = vmatpush.xpose.msk.msrb.mxu0 %vm691_vm2, %v3661_v49  ;;  %3084 = vmatpush.xpose.msk.msrb.mxu1 %vm691_vm2, %v3663_v50 }
  0xd8   : > { %3092 = vmatpush.xpose.msk.msrb.mxu2 %vm691_vm2, %v604_v32  ;;  %v788_v32 = vmul.f32 %v3590_v33, %v675_v24 }
  0xd9   : > { %3101 = vmatpush.xpose.msk.msrb.mxu3 %vm691_vm2, %v669_v31  ;;  %v756_v31 = vmul.f32 %v3590_v33, %v610_v45 }
  0xda   : > { %3076 = vmatpush.xpose.msk.msrb.mxu0 %vm691_vm2, %v3644_v0  ;;  %3085 = vmatpush.xpose.msk.msrb.mxu1 %vm691_vm2, %v3646_v36  ;;  %v724_v0 = vmul.f32 %v3590_v33, %v545_v25  ;;  %v810_v36 = vsel %vm713_vm3, %v788_v32, 0.0  ;;  %v1746_v25 = vld [vmem:[%s5101_s5] sm:$0x1f] }
  0xdb   : > { %744 = vadd.xlane.f32.xlu2 %v743_v28  ;;  %v679_v33 = vld [vmem:[%s5100_s4] sm:$0x1] }
  0xdc   : > { %3093 = vmatpush.xpose.msk.msrb.mxu2 %vm691_vm2, %v3676_v37  ;;  %715 = vadd.xlane.f32.xlu0 %v714_v26  ;;  %v746_v24 = vsel %vm713_vm3, %v724_v0, 0.0 }
  0xdd   : > { %3102 = vmatpush.xpose.msk.msrb.mxu3 %vm691_vm2, %v3678_v38  ;;  %808 = vadd.xlane.f32.xlu1 %v807_v27 }
  0xde   : > { %3077 = vmatpush.xpose.msk.msrb.mxu0 %vm691_vm2, %v3625_v53  ;;  %3086 = vmatpush.xpose.msk.msrb.mxu1 %vm691_vm2, %v3627_v54  ;;  %v778_v53 = vsel %vm713_vm3, %v756_v31, 0.0  ;;  %vm1940_vm3 = vcmask 1045504  }
  0xe0   : > { %3094 = vmatpush.xpose.msk.msrb.mxu2 %vm691_vm2, %v3657_v47 }
  0xe1   : > { %3103 = vmatpush.xpose.msk.msrb.mxu3 %vm691_vm2, %v3659_v48 }
  0xe2   : > { %3078 = vmatpush.xpose.msk.msrb.mxu0 %vm691_vm2, %v3606_v42  ;;  %3087 = vmatpush.xpose.msk.msrb.mxu1 %vm691_vm2, %v3608_v43 }
  0xe3   : > { %779 = vadd.xlane.f32.xlu2 %v778_v53 }
  0xe4   : > { %3095 = vmatpush.xpose.msk.msrb.mxu2 %vm691_vm2, %v3640_v62  ;;  %811 = vadd.xlane.f32.xlu0 %v810_v36 }
  0xe5   : > { %3104 = vmatpush.xpose.msk.msrb.mxu3 %vm691_vm2, %v3642_v63  ;;  %747 = vadd.xlane.f32.xlu1 %v746_v24 }
  0xe6   : > { %3079 = vmatpush.xpose.msk.msrb.mxu0 %vm691_vm2, %v3592_v34  ;;  %3088 = vmatpush.xpose.msk.msrb.mxu1 %vm691_vm2, %v3594_v35 }
  0xe8   : > { %3096 = vmatpush.xpose.msk.msrb.mxu2 %vm691_vm2, %v3621_v51 }
  0xe9   : > { %3105 = vmatpush.xpose.msk.msrb.mxu3 %vm691_vm2, %v3623_v52  ;;  %3080 = vmatmul.msk.f32.vlgmr.msrb.gmra.mxu0 %vm691_vm2, %v679_v33 }
  0xea   : > { %3108 = vmatpush.msk.msra.mxu0 %vm438_vm0, %v1746_v25  ;;  %3117 = vmatpush.msk.msra.mxu1 %vm438_vm0, %v1746_v25 }
  0xeb   : > { %3089 = vmatmul.msk.f32.vlgmr.msrb.gmra.mxu1 %vm691_vm2, %v679_v33 }
  0xec   : > { %3097 = vmatpush.xpose.msk.msrb.mxu2 %vm691_vm2, %v3602_v40  ;;  %v5139_v40 = vld [vmem:[#allocation10_spill] sm:$0xff] }
  0xed   : > { %3106 = vmatpush.xpose.msk.msrb.mxu3 %vm691_vm2, %v3604_v41  ;;  %v5140_v41 = vld [vmem:[#allocation11_spill] sm:$0xff] }
  0xef   : > { %3098 = vmatmul.msk.f32.vlgmr.msrb.gmra.mxu2 %vm691_vm2, %v679_v33 }
  0xf0   : > { %3126 = vmatpush.msk.msra.mxu2 %vm438_vm0, %v1746_v25  ;;  %3107 = vmatmul.msk.f32.vlgmr.msrb.gmra.mxu3 %vm691_vm2, %v679_v33 }
  0xf1   : > { %3135 = vmatpush.msk.msra.mxu3 %vm438_vm0, %v1746_v25  ;;  %3109 = vmatmul.msk.f32.vlgmr.msra.gmra.mxu0 %vm413_vm1, %v3428_v1 }
  0xf3   : > { %3118 = vmatmul.msk.f32.vlgmr.msra.gmra.mxu1 %vm413_vm1, %v3431_v2 }
  0xf7   : > { %3127 = vmatmul.msk.f32.vlgmr.msra.gmra.mxu2 %vm413_vm1, %v3434_v3 }
  0xf8   : > { %3136 = vmatmul.msk.f32.vlgmr.msra.gmra.mxu3 %vm413_vm1, %v3441_v4 }
  0xf9   : > { %3110 = vmatmul.msk.f32.gmra.mxu0 %vm413_vm1, %v3448_v5 }
  0xfb   : > { %3119 = vmatmul.msk.f32.gmra.mxu1 %vm413_vm1, %v3451_v6 }
  0xff   : > { %3128 = vmatmul.msk.f32.gmra.mxu2 %vm413_vm1, %v3454_v7 }
 0x100   : > { %3137 = vmatmul.msk.f32.gmra.mxu3 %vm413_vm1, %v3457_v8 }
 0x101   : > { %3111 = vmatmul.msk.f32.gmra.mxu0 %vm413_vm1, %v3468_v9 }
 0x103   : > { %3120 = vmatmul.msk.f32.gmra.mxu1 %vm413_vm1, %v3471_v10 }
 0x106   : > { %v694_v2 = vpop.xlane.xlu1 %693 }
 0x107   : > { %v727_v1 = vpop.xlane.xlu0 %726  ;;  %3129 = vmatmul.msk.f32.gmra.mxu2 %vm413_vm1, %v3474_v11  ;;  %994 = vperm.xlu1 %3267, %v694_v2   ;;  %v5131_v11 = vld [vmem:[#allocation2_spill] sm:$0xff] }
 0x108   : > { %3138 = vmatmul.msk.f32.gmra.mxu3 %vm413_vm1, %v3477_v12  ;;  %1034 = vperm.xlu2 %3268, %v727_v1   ;;  %v5132_v12 = vld [vmem:[#allocation3_spill] sm:$0xff]  ;;  %v3879_v1 = vld [vmem:[%s5097_s1] sm:$0xff] }
 0x109   : > { %3112 = vmatmul.msk.f32.gmra.mxu0 %vm413_vm1, %v3488_v13  ;;  %vm1284_vm6 = vcmp.gt.f32.partialorder %v3879_v1, 0.1 }
 0x10b   : > { %3121 = vmatmul.msk.f32.gmra.mxu1 %vm413_vm1, %v3491_v14  ;;  %v5133_v14 = vld [vmem:[#allocation4_spill] sm:$0xff] }
 0x10e   : > { %v697_v5 = vpop.xlane.xlu2 %696 }
 0x10f   : > { %v759_v3 = vpop.xlane.xlu0 %758  ;;  %v791_v4 = vpop.xlane.xlu1 %790  ;;  %3130 = vmatmul.msk.f32.gmra.mxu2 %vm413_vm1, %v3494_v15  ;;  %999 = vperm.xlu0 %3269, %v697_v5   ;;  %v5134_v15 = vld [vmem:[#allocation5_spill] sm:$0xff]  ;;  %v3888_v5 = vld [vmem:[%s5097_s1 + $0x10] sm:$0xff] }
 0x110   : > { %3139 = vmatmul.msk.f32.gmra.mxu3 %vm413_vm1, %v3497_v16  ;;  %1074 = vperm.xlu2 %3268, %v759_v3   ;;  %5144 = vst [vmem:[#allocation5_spill] sm:$0xff] %v3879_v1  ;;  %vm1286_vm7 = vcmp.gt.f32.partialorder %v3888_v5, 0.1 }
 0x111   : > { %1114 = vperm.xlu1 %3267, %v791_v4   ;;  %3113 = vmatmul.msk.f32.gmra.mxu0 %vm413_vm1, %v3508_v17 }
 0x113   : > { %3122 = vmatmul.msk.f32.gmra.mxu1 %vm413_vm1, %v3511_v18  ;;  %v5135_v18 = vld [vmem:[#allocation6_spill] sm:$0xff] }
 0x116   : > { %v700_v8 = vpop.xlane.xlu2 %699 }
 0x117   : > { %v762_v6 = vpop.xlane.xlu0 %761  ;;  %v730_v7 = vpop.xlane.xlu1 %729  ;;  %3131 = vmatmul.msk.f32.gmra.mxu2 %vm413_vm1, %v3514_v19  ;;  %v5136_v19 = vld [vmem:[#allocation7_spill] sm:$0xff] }
 0x118   : > { %3140 = vmatmul.msk.f32.gmra.mxu3 %vm413_vm1, %v3517_v20  ;;  %1079 = vperm.xlu0 %3269, %v762_v6  }
 0x119   : > { %1039 = vperm.xlu1 %3267, %v730_v7   ;;  %3114 = vmatmul.msk.f32.gmra.mxu0 %vm413_vm1, %v3528_v21  ;;  %v5137_v21 = vld [vmem:[#allocation8_spill] sm:$0xff] }
 0x11b   : > { %3123 = vmatmul.msk.f32.gmra.mxu1 %vm413_vm1, %v3531_v22  ;;  %v5138_v22 = vld [vmem:[#allocation9_spill] sm:$0xff] }
 0x11e   : > { %v765_v13 = vpop.xlane.xlu2 %764 }
 0x11f   : > { %v733_v9 = vpop.xlane.xlu0 %732  ;;  %v794_v10 = vpop.xlane.xlu1 %793  ;;  %3132 = vmatmul.msk.f32.gmra.mxu2 %vm413_vm1, %v5131_v11  ;;  %v3897_v11 = vld [vmem:[%s5097_s1 + $0x8] sm:$0xff] }
 0x120   : > { %3141 = vmatmul.msk.f32.gmra.mxu3 %vm413_vm1, %v5132_v12  ;;  %1119 = vperm.xlu2 %3268, %v794_v10   ;;  %vm1285_vm10 = vcmp.gt.f32.partialorder %v3897_v11, 0.1 }
 0x121   : > { %1004 = vperm.xlu0 %3269, %v700_v8   ;;  %3115 = vmatmul.msk.f32.gmra.mxu0 %vm413_vm1, %v5133_v14 }
 0x123   : > { %3124 = vmatmul.msk.f32.gmra.mxu1 %vm413_vm1, %v5134_v15 }
 0x126   : > { %v797_v20 = vpop.xlane.xlu2 %796 }
 0x127   : > { %v768_v16 = vpop.xlane.xlu0 %767  ;;  %v703_v17 = vpop.xlane.xlu1 %702  ;;  %3133 = vmatmul.msk.f32.gmra.mxu2 %vm413_vm1, %v5135_v18  ;;  %1124 = vperm.xlu1 %3267, %v797_v20  }
 0x128   : > { %3142 = vmatmul.msk.f32.gmra.mxu3 %vm413_vm1, %v5136_v19  ;;  %1044 = vperm.xlu2 %3268, %v733_v9  }
 0x129   : > { %3116 = vmatmul.msk.f32.gmra.mxu0 %vm413_vm1, %v5137_v21 }
 0x12b   : > { %3125 = vmatmul.msk.f32.gmra.mxu1 %vm413_vm1, %v5138_v22 }
 0x12e   : > { %v736_v42 = vpop.xlane.xlu2 %735 }
 0x12f   : > { %v800_v34 = vpop.xlane.xlu1 %799  ;;  %v706_v35 = vpop.xlane.xlu0 %705  ;;  %3134 = vmatmul.msk.f32.gmra.mxu2 %vm413_vm1, %v5139_v40  ;;  %1009 = vperm.xlu1 %3267, %v703_v17  }
 0x130   : > { %3143 = vmatmul.msk.f32.gmra.mxu3 %vm413_vm1, %v5140_v41  ;;  %1084 = vperm.xlu2 %3268, %v765_v13  }
 0x131   : > { %1049 = vperm.xlu0 %3269, %v736_v42  }
 0x136   : > { %v771_v52 = vpop.xlane.xlu2 %770 }
 0x137   : > { %v739_v43 = vpop.xlane.xlu1 %738  ;;  %v803_v51 = vpop.xlane.xlu0 %802  ;;  %1129 = vperm.xlu1 %3267, %v800_v34  }
 0x138   : > { %1089 = vperm.xlu2 %3268, %v768_v16  }
 0x139   : > { %1094 = vperm.xlu0 %3269, %v771_v52  }
 0x13e   : > { %v709_v63 = vpop.xlane.xlu2 %708 }
 0x13f   : > { %v774_v54 = vpop.xlane.xlu1 %773  ;;  %v742_v62 = vpop.xlane.xlu0 %741 }
 0x140   : > { %1014 = vperm.xlu2 %3268, %v706_v35   ;;  %1099 = vperm.xlu1 %3267, %v774_v54  }
 0x146   : > { %v806_v48 = vpop.xlane.xlu2 %805 }
 0x147   : > { %v777_v47 = vpop.xlane.xlu0 %776  ;;  %1139 = vperm.xlu0 %3269, %v806_v48  }
 0x148   : > { %1134 = vperm.xlu2 %3268, %v803_v51   ;;  %v712_v49 = vpop.xlane.xlu1 %711 }
 0x14e   : > { %v745_v50 = vpop.xlane.xlu2 %744 }
 0x14f   : > { %v716_v37 = vpop.xlane.xlu0 %715 }
 0x150   : > { %1104 = vperm.xlu2 %3268, %v777_v47   ;;  %v809_v38 = vpop.xlane.xlu1 %808 }
 0x151   : > { %1144 = vperm.xlu1 %3267, %v809_v38  }
 0x156   : > { %v780_v59 = vpop.xlane.xlu2 %779 }
 0x157   : > { %v812_v56 = vpop.xlane.xlu0 %811  ;;  %1109 = vperm.xlu0 %3269, %v780_v59  }
 0x158   : > { %1149 = vperm.xlu2 %3268, %v812_v56   ;;  %v748_v57 = vpop.xlane.xlu1 %747 }
 0x159   : > { %1054 = vperm.xlu1 %3267, %v739_v43  }
 0x15f   : > { %1019 = vperm.xlu0 %3269, %v709_v63  }
 0x160   : > { %1059 = vperm.xlu2 %3268, %v742_v62  }
 0x161   : > { %1024 = vperm.xlu1 %3267, %v712_v49  }
 0x162   : > { %v1035_v58 = vpop.permute.xlu2 %1034 }
 0x166   : > { %v3846_v60 = vpop.f32.mrf.mxu0 }
 0x167   : > { %1064 = vperm.xlu0 %3269, %v745_v50  }
 0x168   : > { %1029 = vperm.xlu2 %3268, %v716_v37   ;;  %v901_v61 = vpop.f32.mrf.mxu1 }
 0x169   : > { %1069 = vperm.xlu1 %3267, %v748_v57   ;;  %v3864_v26 = vperm.slane %v901_v61, 0 }
 0x16a   : > { %v3848_v45 = vpop.permute.xlu2 %1074 }
 0x16b   : > { %v1164_v53 = vadd.f32 %v3864_v26, %v1035_v58 }
 0x16d   : > { %v1228_v33 = vmul.f32 0.2, %v1164_v53  ;;  %vm1196_vm4 = vcmp.gt.f32.partialorder %v1164_v53, 0.0 }
 0x16e   : > { %v3852_v55 = vpop.f32.mrf.mxu0 }
 0x16f   : > { %5141 = vst [vmem:[#allocation2_spill] sm:$0xff] %v3852_v55  ;;  %v1260_v8 = vsel %vm1196_vm4, %v1164_v53, %v1228_v33 }
 0x170   : > { %v3854_v30 = vpop.f32.mrf.mxu1  ;;  %v3904_v16 = vsel %vm1284_vm6, %v1260_v8, -9e+15 }
 0x171   : > { %5142 = vst [vmem:[#allocation3_spill] sm:$0xff] %v3854_v30  ;;  %v1363_v21 = vsel %vm1340_vm9, %v3904_v16, -inf }
 0x172   : > { %v945_v29 = vpop.f32.mrf.mxu2  ;;  %5145 = vst [vmem:[#allocation6_spill] sm:$0xff] %v3904_v16 }
 0x173   : > { %v3850_v46 = vpop.f32.mrf.mxu3  ;;  %v3941_v37 = vperm.slane %v945_v29, 0  ;;  %v3961_v29 = vperm.slane %v3846_v60, 0 }
 0x174   : > { %v3954_v61 = vperm.slane %v3850_v46, 0 }
 0x176   : > { %v3866_v27 = vpop.f32.mrf.mxu0 }
 0x178   : > { %v3868_v31 = vpop.f32.mrf.mxu1 }
 0x179   : > { %v3858_v44 = vpop.permute.xlu1 %994  ;;  %5143 = vst [vmem:[#allocation4_spill] sm:$0xff] %v3868_v31 }
 0x17a   : > { %v3856_v39 = vpop.permute.xlu2 %1119  ;;  %v3860_v23 = vpop.f32.mrf.mxu2  ;;  %v1156_v46 = vadd.f32 %v3961_v29, %v3858_v44 }
 0x17b   : > { %v3862_v28 = vpop.f32.mrf.mxu3 }
 0x17c   : > { %vm1188_vm14 = vcmp.gt.f32.partialorder %v1156_v46, 0.0 }
 0x17e   : > { %v3881_v2 = vpop.f32.mrf.mxu0 }
 0x180   : > { %v3883_v4 = vpop.f32.mrf.mxu1 }
 0x181   : > { %v1000_v14 = vpop.permute.xlu0 %999 }
 0x182   : > { %v1045_v32 = vpop.permute.xlu2 %1044  ;;  %v3871_v36 = vpop.f32.mrf.mxu2 }
 0x183   : > { %v1115_v0 = vpop.permute.xlu1 %1114  ;;  %v3873_v24 = vpop.f32.mrf.mxu3  ;;  %v1166_v25 = vadd.f32 %v3864_v26, %v1045_v32  ;;  %v1172_v32 = vadd.f32 %v3941_v37, %v3848_v45 }
 0x185   : > { %v1230_v3 = vmul.f32 0.2, %v1166_v25  ;;  %vm1198_vm5 = vcmp.gt.f32.partialorder %v1166_v25, 0.0  ;;  %vm1204_vm11 = vcmp.gt.f32.partialorder %v1172_v32, 0.0 }
 0x186   : > { %v3915_v20 = vpop.f32.mrf.mxu0 }
 0x187   : > { %v1262_v13 = vsel %vm1198_vm5, %v1166_v25, %v1230_v3  ;;  %v1180_v25 = vadd.f32 %v3954_v61, %v1115_v0  ;;  %v1181_v3 = vadd.f32 %v3954_v61, %v3856_v39 }
 0x188   : > { %v3909_v18 = vsel %vm1286_vm7, %v1262_v13, -9e+15  ;;  %v3921_v40 = vpop.f32.mrf.mxu1 }
 0x189   : > { %5146 = vst [vmem:[#allocation7_spill] sm:$0xff] %v3909_v18  ;;  %v1366_v41 = vsel %vm1340_vm9, %v3909_v18, -inf  ;;  %v1244_v45 = vmul.f32 0.2, %v1180_v25  ;;  %vm1212_vm12 = vcmp.gt.f32.partialorder %v1180_v25, 0.0  ;;  %vm1213_vm13 = vcmp.gt.f32.partialorder %v1181_v3, 0.0 }
 0x18a   : > { %v1085_v6 = vpop.permute.xlu2 %1084  ;;  %v3892_v10 = vpop.f32.mrf.mxu2  ;;  %v1245_v44 = vmul.f32 0.2, %v1181_v3 }
 0x18b   : > { %v1040_v7 = vpop.permute.xlu1 %1039  ;;  %v3899_v12 = vpop.f32.mrf.mxu3  ;;  %v1174_v60 = vadd.f32 %v3941_v37, %v1085_v6  ;;  %v1276_v6 = vsel %vm1212_vm12, %v1180_v25, %v1244_v45 }
 0x18c   : > { %v1165_v9 = vadd.f32 %v3864_v26, %v1040_v7  ;;  %v1080_v52 = vpop.permute.xlu0 %1079  ;;  %v1236_v7 = vmul.f32 0.2, %v1172_v32  ;;  %v1277_v25 = vsel %vm1213_vm13, %v1181_v3, %v1245_v44  ;;  %v4010_v44 = vld [vmem:[%s5097_s1 + $0x20] sm:$0xff] }
 0x18d   : > { %v1173_v8 = vadd.f32 %v3941_v37, %v1080_v52  ;;  %v1238_v52 = vmul.f32 0.2, %v1174_v60  ;;  %vm1206_vm1 = vcmp.gt.f32.partialorder %v1174_v60, 0.0 }
 0x18e   : > { %vm1197_vm8 = vcmp.gt.f32.partialorder %v1165_v9, 0.0  ;;  %v1229_v15 = vmul.f32 0.2, %v1165_v9  ;;  %v3933_v62 = vpop.f32.mrf.mxu0 }
 0x18f   : > { %v1237_v39 = vmul.f32 0.2, %v1173_v8  ;;  %vm1205_vm15 = vcmp.gt.f32.partialorder %v1173_v8, 0.0 }
 0x190   : > { %v1261_v17 = vsel %vm1197_vm8, %v1165_v9, %v1229_v15  ;;  %v3939_v49 = vpop.f32.mrf.mxu1  ;;  %v1157_v9 = vadd.f32 %v3961_v29, %v1000_v14 }
 0x191   : > { %v3913_v19 = vsel %vm1285_vm10, %v1261_v17, -9e+15  ;;  %v1268_v17 = vsel %vm1204_vm11, %v1172_v32, %v1236_v7  ;;  %v1269_v16 = vsel %vm1205_vm15, %v1173_v8, %v1237_v39 }
 0x192   : > { %5147 = vst [vmem:[#allocation8_spill] sm:$0xff] %v3913_v19  ;;  %v1364_v22 = vsel %vm1340_vm9, %v3913_v19, -inf  ;;  %v1090_v35 = vpop.permute.xlu2 %1089  ;;  %v3925_v42 = vpop.f32.mrf.mxu2  ;;  %vm1189_vm0 = vcmp.gt.f32.partialorder %v1157_v9, 0.0  ;;  %v3987_v32 = vsel %vm1284_vm6, %v1268_v17, -9e+15  ;;  %v1270_v17 = vsel %vm1206_vm1, %v1174_v60, %v1238_v52 }
 0x193   : > { %v1365_v34 = vmax.f32 %v1363_v21, %v1364_v22  ;;  %v3927_v43 = vpop.f32.mrf.mxu3  ;;  %v3978_v21 = vld [vmem:[%s5097_s1 + $0x18] sm:$0xff]  ;;  %v1220_v22 = vmul.f32 0.2, %v1156_v46  ;;  %v1175_v18 = vadd.f32 %v3941_v37, %v1090_v35  ;;  %v3995_v35 = vsel %vm1284_vm6, %v1276_v6, -9e+15 }
 0x194   : > { %v1005_v50 = vpop.permute.xlu0 %1004  ;;  %vm1287_vm2 = vcmp.gt.f32.partialorder %v3978_v21, 0.1  ;;  %v4004_v3 = vsel %vm1285_vm10, %v1269_v16, -9e+15  ;;  %v4016_v60 = vsel %vm1285_vm10, %v1277_v25, -9e+15 }
 0x195   : > { %v3929_v51 = vmax.f32 %v1365_v34, %v1366_v41  ;;  %v1221_v41 = vmul.f32 0.2, %v1157_v9  ;;  %v1252_v45 = vsel %vm1188_vm14, %v1156_v46, %v1220_v22  ;;  %v1239_v8 = vmul.f32 0.2, %v1175_v18 }
 0x196   : > { %v3951_v58 = vpop.f32.mrf.mxu0  ;;  %vm1207_vm4 = vcmp.gt.f32.partialorder %v1175_v18, 0.0  ;;  %v1158_v46 = vadd.f32 %v3961_v29, %v1005_v50  ;;  %v4020_v16 = vsel %vm1284_vm6, %v1252_v45, -9e+15  ;;  %v4024_v50 = vsel %vm1340_vm9, %v3995_v35, -inf }
 0x197   : > { %5148 = vst [vmem:[#allocation9_spill] sm:$0xff] %v3929_v51  ;;  %v1253_v55 = vsel %vm1189_vm0, %v1157_v9, %v1221_v41  ;;  %v1385_v41 = vsel %vm1340_vm9, %v4004_v3, -inf  ;;  %v1271_v52 = vsel %vm1207_vm4, %v1175_v18, %v1239_v8  ;;  %v4048_v18 = vsel %vm1340_vm9, %v4020_v16, -inf }
 0x198   : > { %v3958_v53 = vpop.f32.mrf.mxu1  ;;  %v4028_v22 = vsel %vm1285_vm10, %v1253_v55, -9e+15  ;;  %v4041_v55 = vsel %vm1340_vm9, %v4016_v60, -inf  ;;  %v1222_v11 = vmul.f32 0.2, %v1158_v46  ;;  %vm1190_vm8 = vcmp.gt.f32.partialorder %v1158_v46, 0.0 }
 0x199   : > { %v1125_v63 = vpop.permute.xlu1 %1124  ;;  %vm1288_vm10 = vcmp.gt.f32.partialorder %v4010_v44, 0.1  ;;  %v4068_v8 = vsel %vm1287_vm2, %v1271_v52, -9e+15  ;;  %vm1354_vm1 = vcmask 504832  }
 0x19a   : > { %v3931_v54 = vpop.permute.xlu2 %1014  ;;  %v3935_v47 = vpop.f32.mrf.mxu2  ;;  %v1182_v7 = vadd.f32 %v3954_v61, %v1125_v63  ;;  %v4000_v63 = vsel %vm1340_vm9, %v3987_v32, -inf }
 0x19b   : > { %v3937_v48 = vpop.f32.mrf.mxu3 }
 0x19c   : > { %v1246_v9 = vmul.f32 0.2, %v1182_v7  ;;  %vm1214_vm5 = vcmp.gt.f32.partialorder %v1182_v7, 0.0 }
 0x19e   : > { %v3980_v34 = vpop.f32.mrf.mxu0  ;;  %v1278_v45 = vsel %vm1214_vm5, %v1182_v7, %v1246_v9  ;;  %v1386_v7 = vmax.f32 %v4000_v63, %v1385_v41 }
 0x1a0   : > { %v3983_v19 = vpop.f32.mrf.mxu1 }
 0x1a1   : > { %v3949_v57 = vpop.permute.xlu1 %1009 }
 0x1a2   : > { %v3943_v38 = vpop.permute.xlu2 %1134  ;;  %v3945_v59 = vpop.f32.mrf.mxu2  ;;  %v1159_v52 = vadd.f32 %v3961_v29, %v3949_v57 }
 0x1a3   : > { %v3947_v56 = vpop.f32.mrf.mxu3  ;;  %v3964_v33 = vpop.permute.xlu0 %1049  ;;  %v1184_v25 = vadd.f32 %v3954_v61, %v3943_v38  ;;  %v1407_v38 = vmax.f32 %v4024_v50, %v4041_v55  ;;  %v4075_v55 = vsel %vm1286_vm7, %v1278_v45, -9e+15 }
 0x1a4   : > { %v1408_v41 = vsel %vm1340_vm9, %v4075_v55, -inf  ;;  %vm1191_vm5 = vcmp.gt.f32.partialorder %v1159_v52, 0.0 }
 0x1a5   : > { %vm1216_vm11 = vcmp.gt.f32.partialorder %v1184_v25, 0.0  ;;  %v1409_v57 = vmax.f32 %v1407_v38, %v1408_v41 }
 0x1a9   : > { %v1130_v14 = vpop.permute.xlu1 %1129 }
 0x1aa   : > { %v1869_v13 = vpop.f32.mrf.mxu2  ;;  %v3973_v0 = vpop.permute.xlu2 %1104  ;;  %v1183_v51 = vadd.f32 %v3954_v61, %v1130_v14 }
 0x1ab   : > { %v1910_v15 = vpop.f32.mrf.mxu3  ;;  %v1095_v30 = vpop.permute.xlu0 %1094 }
 0x1ac   : > { %v1247_v14 = vmul.f32 0.2, %v1183_v51  ;;  %vm1215_vm6 = vcmp.gt.f32.partialorder %v1183_v51, 0.0 }
 0x1ae   : > { %v1279_v9 = vsel %vm1215_vm6, %v1183_v51, %v1247_v14  ;;  %v1254_v51 = vsel %vm1190_vm8, %v1158_v46, %v1222_v11 }
 0x1b2   : > { %v1872_v39 = vpop.f32.mrf.mxu2  ;;  %v1150_v6 = vpop.permute.xlu2 %1149 }
 0x1b3   : > { %v1913_v31 = vpop.f32.mrf.mxu3  ;;  %3162 = vmatpush.msk.msrb.mxu2 %vm1940_vm3, %v1872_v39  ;;  %v1100_v39 = vpop.permute.xlu1 %1099 }
 0x1b4   : > { %3171 = vmatpush.msk.msrb.mxu3 %vm1940_vm3, %v1913_v31  ;;  %v4032_v31 = vsel %vm1286_vm7, %v1270_v17, -9e+15  ;;  %v1176_v17 = vadd.f32 %v3941_v37, %v1095_v30  ;;  %v4060_v30 = vld [vmem:[%s5097_s1 + $0x28] sm:$0xff]  ;;  %v1177_v1 = vadd.f32 %v3941_v37, %v1100_v39  ;;  %v1223_v39 = vmul.f32 0.2, %v1159_v52 }
 0x1b5   : > { %2089 = vmatpush.msrb.mxu2 %v1869_v13  ;;  %v1790_v13 = vpop.f32.mrf.mxu0  ;;  %vm1289_vm12 = vcmp.gt.f32.partialorder %v4060_v30, 0.1 }
 0x1b6   : > { %2157 = vmatpush.msrb.mxu3 %v1910_v15  ;;  %v4054_v15 = vsel %vm1340_vm9, %v4028_v22, -inf  ;;  %3144 = vmatpush.msk.msrb.mxu0 %vm1940_vm3, %v1790_v13  ;;  %v1248_v13 = vmul.f32 0.2, %v1184_v25  ;;  %v1240_v14 = vmul.f32 0.2, %v1176_v17  ;;  %vm1208_vm14 = vcmp.gt.f32.partialorder %v1176_v17, 0.0 }
 0x1b7   : > { %2090 = vmatpush.msrb.mxu2 %v3945_v59  ;;  %v1831_v59 = vpop.f32.mrf.mxu1  ;;  %v1241_v11 = vmul.f32 0.2, %v1177_v1 }
 0x1b8   : > { %2158 = vmatpush.msrb.mxu3 %v3947_v56  ;;  %v1387_v56 = vsel %vm1340_vm9, %v4032_v31, -inf  ;;  %3153 = vmatpush.msk.msrb.mxu1 %vm1940_vm3, %v1831_v59 }
 0x1b9   : > { %v1140_v50 = vpop.permute.xlu0 %1139  ;;  %2091 = vmatpush.msrb.mxu2 %v3935_v47  ;;  %1953 = vmatpush.msrb.mxu0 %v3980_v34  ;;  %v4088_v47 = vld [vmem:[%s5097_s1 + $0x30] sm:$0xff]  ;;  %v1187_v34 = vadd.f32 %v3954_v61, %v1150_v6  ;;  %v4108_v6 = vld [vmem:[%s5097_s1 + $0x38] sm:$0x3f] }
 0x1ba   : > { %2159 = vmatpush.msrb.mxu3 %v3937_v48  ;;  %v1185_v63 = vadd.f32 %v3954_v61, %v1140_v50  ;;  %v4092_v48 = vsel %vm1287_vm2, %v1279_v9, -9e+15  ;;  %2021 = vmatpush.msrb.mxu1 %v3983_v19  ;;  %v4114_v19 = vsel %vm1286_vm7, %v1254_v51, -9e+15  ;;  %vm1290_vm15 = vcmp.gt.f32.partialorder %v4088_v47, 0.1 }
 0x1bb   : > { %2092 = vmatpush.msrb.mxu2 %v3925_v42  ;;  %1954 = vmatpush.msrb.mxu0 %v3951_v58  ;;  %v4097_v42 = vmax.f32 %v1386_v7, %v1387_v56  ;;  %v1280_v58 = vsel %vm1216_vm11, %v1184_v25, %v1248_v13  ;;  %v1410_v5 = vsel %vm1340_vm9, %v4092_v48, -inf  ;;  %vm1209_vm7 = vcmp.gt.f32.partialorder %v1177_v1, 0.0 }
 0x1bc   : > { %2160 = vmatpush.msrb.mxu3 %v3927_v43  ;;  %vm1217_vm13 = vcmp.gt.f32.partialorder %v1185_v63, 0.0  ;;  %v1249_v46 = vmul.f32 0.2, %v1185_v63  ;;  %v4101_v43 = vsel %vm1340_vm9, %v4068_v8, -inf  ;;  %2022 = vmatpush.msrb.mxu1 %v3958_v53  ;;  %vm1291_vm0 = vcmp.gt.f32.partialorder %v4108_v6, 0.1 }
 0x1bd   : > { %2093 = vmatpush.msrb.mxu2 %v3892_v10  ;;  %1955 = vmatpush.msrb.mxu0 %v3933_v62  ;;  %v1178_v10 = vadd.f32 %v3941_v37, %v3973_v0  ;;  %v1272_v62 = vsel %vm1208_vm14, %v1176_v17, %v1240_v14  ;;  %v1251_v53 = vmul.f32 0.2, %v1187_v34  ;;  %v1390_v0 = vmax.f32 %v4097_v42, %v4101_v43 }
 0x1be   : > { %2161 = vmatpush.msrb.mxu3 %v3899_v12  ;;  %v4126_v12 = vpop.permute.xlu2 %1059  ;;  %v1281_v25 = vsel %vm1217_vm13, %v1185_v63, %v1249_v46  ;;  %2023 = vmatpush.msrb.mxu1 %v3939_v49  ;;  %v4139_v45 = vsel %vm1288_vm10, %v1280_v58, -9e+15  ;;  %vm1219_vm4 = vcmp.gt.f32.partialorder %v1187_v34, 0.0  ;;  %v1273_v49 = vsel %vm1209_vm7, %v1177_v1, %v1241_v11  ;;  %v5151_v46 = vld [vmem:[#allocation3_spill] sm:$0xff] }
 0x1bf   : > { %2094 = vmatpush.msrb.mxu2 %v3871_v36  ;;  %1956 = vmatpush.msrb.mxu0 %v3915_v20  ;;  %v1160_v36 = vadd.f32 %v3961_v29, %v3931_v54  ;;  %v4148_v20 = vsel %vm1289_vm12, %v1281_v25, -9e+15  ;;  %v1242_v38 = vmul.f32 0.2, %v1178_v10  ;;  %v1412_v1 = vsel %vm1340_vm9, %v4139_v45, -inf }
 0x1c0   : > { %2162 = vmatpush.msrb.mxu3 %v3873_v24  ;;  %v1411_v24 = vmax.f32 %v1409_v57, %v1410_v5  ;;  %2024 = vmatpush.msrb.mxu1 %v3921_v40  ;;  %vm1210_vm6 = vcmp.gt.f32.partialorder %v1178_v10, 0.0  ;;  %v1283_v54 = vsel %vm1219_vm4, %v1187_v34, %v1251_v53  ;;  %v1414_v40 = vsel %vm1340_vm9, %v4148_v20, -inf }
 0x1c1   : > { %2095 = vmatpush.msrb.mxu2 %v3860_v23  ;;  %1957 = vmatpush.msrb.mxu0 %v3881_v2  ;;  %v4154_v23 = vsel %vm1288_vm10, %v1272_v62, -9e+15  ;;  %v4164_v2 = vsel %vm1289_vm12, %v1273_v49, -9e+15  ;;  %v1224_v59 = vmul.f32 0.2, %v1160_v36  ;;  %v1167_v56 = vadd.f32 %v3864_v26, %v3964_v33 }
 0x1c2   : > { %2163 = vmatpush.msrb.mxu3 %v3862_v28  ;;  %2025 = vmatpush.msrb.mxu1 %v3883_v4  ;;  %v1391_v7 = vsel %vm1340_vm9, %v4154_v23, -inf  ;;  %v1413_v9 = vmax.f32 %v1411_v24, %v1412_v1  ;;  %v5149_v4 = vld [vmem:[#allocation4_spill] sm:$0xff]  ;;  %vm1192_vm11 = vcmp.gt.f32.partialorder %v1160_v36, 0.0  ;;  %v1255_v50 = vsel %vm1191_vm5, %v1159_v52, %v1223_v39 }
 0x1c3   : > { %v1145_v17 = vpop.permute.xlu1 %1144  ;;  %1958 = vmatpush.msrb.mxu0 %v3866_v27  ;;  %v5150_v27 = vld [vmem:[#allocation2_spill] sm:$0xff]  ;;  %v1274_v13 = vsel %vm1210_vm6, %v1178_v10, %v1242_v38  ;;  %v1393_v51 = vsel %vm1340_vm9, %v4164_v2, -inf  ;;  %v4180_v33 = vsel %vm1291_vm0, %v1283_v54, -9e+15  ;;  %v1343_v42 = vmax.f32 %v4048_v18, %v4054_v15 }
 0x1c4   : > { %v1186_v28 = vadd.f32 %v3954_v61, %v1145_v17  ;;  %2026 = vmatpush.msrb.mxu1 %v5149_v4  ;;  %v1415_v14 = vmax.f32 %v1413_v9, %v1414_v40  ;;  %v1344_v43 = vsel %vm1340_vm9, %v4114_v19, -inf  ;;  %v1392_v41 = vmax.f32 %v1390_v0, %v1391_v7 }
 0x1c5   : > { %1959 = vmatpush.msrb.mxu0 %v5150_v27  ;;  %v1256_v10 = vsel %vm1192_vm11, %v1160_v36, %v1224_v59  ;;  %v1231_v5 = vmul.f32 0.2, %v1167_v56  ;;  %v4196_v53 = vsel %vm1287_vm2, %v1255_v50, -9e+15  ;;  %v4200_v18 = vsel %vm1290_vm15, %v1274_v13, -9e+15 }
 0x1c6   : > { %vm1218_vm8 = vcmp.gt.f32.partialorder %v1186_v28, 0.0  ;;  %v1250_v61 = vmul.f32 0.2, %v1186_v28  ;;  %2027 = vmatpush.msrb.mxu1 %v5151_v46  ;;  %v1030_v52 = vpop.permute.xlu2 %1029  ;;  %v1394_v15 = vmax.f32 %v1392_v41, %v1393_v51  ;;  %v1418_v0 = vsel %vm1354_vm1, %v4180_v33, -inf }
 0x1c7   : > { %v1163_v36 = vadd.f32 %v3961_v29, %v1030_v52  ;;  %vm1199_vm14 = vcmp.gt.f32.partialorder %v1167_v56, 0.0  ;;  %v1345_v17 = vmax.f32 %v1343_v42, %v1344_v43  ;;  %v1346_v1 = vsel %vm1340_vm9, %v4196_v53, -inf }
 0x1c8   : > { %v1282_v63 = vsel %vm1218_vm8, %v1186_v28, %v1250_v61  ;;  %v4209_v28 = vsel %vm1288_vm10, %v1256_v10, -9e+15  ;;  %v1263_v61 = vsel %vm1199_vm14, %v1167_v56, %v1231_v5 }
 0x1c9   : > { %v4184_v34 = vsel %vm1290_vm15, %v1282_v63, -9e+15  ;;  %v1110_v11 = vpop.permute.xlu0 %1109  ;;  %v1227_v7 = vmul.f32 0.2, %v1163_v36  ;;  %vm1195_vm7 = vcmp.gt.f32.partialorder %v1163_v36, 0.0  ;;  %v1347_v50 = vmax.f32 %v1345_v17, %v1346_v1 }
 0x1ca   : > { %v1416_v58 = vsel %vm1340_vm9, %v4184_v34, -inf  ;;  %v1179_v62 = vadd.f32 %v3941_v37, %v1110_v11  ;;  %v1395_v37 = vsel %vm1340_vm9, %v4200_v18, -inf  ;;  %v4224_v46 = vsel %vm1287_vm2, %v1263_v61, -9e+15 }
 0x1cb   : > { %v1417_v25 = vmax.f32 %v1415_v14, %v1416_v58  ;;  %v1055_v57 = vpop.permute.xlu1 %1054  ;;  %v1396_v54 = vmax.f32 %v1394_v15, %v1395_v37  ;;  %v1348_v14 = vsel %vm1340_vm9, %v4209_v28, -inf  ;;  %v1259_v41 = vsel %vm1195_vm7, %v1163_v36, %v1227_v7 }
 0x1cc   : > { %vm1211_vm13 = vcmp.gt.f32.partialorder %v1179_v62, 0.0  ;;  %v1243_v49 = vmul.f32 0.2, %v1179_v62  ;;  %v1168_v52 = vadd.f32 %v3864_v26, %v1055_v57  ;;  %v4230_v5 = vsel %vm1340_vm9, %v4224_v46, -inf }
 0x1cd   : > { %v1419_v24 = vmax.f32 %v1417_v25, %v1418_v0  ;;  %v1169_v0 = vadd.f32 %v3864_v26, %v4126_v12 }
 0x1ce   : > { %v1275_v38 = vsel %vm1211_vm13, %v1179_v62, %v1243_v49  ;;  %v1349_v62 = vmax.f32 %v1347_v50, %v1348_v14  ;;  %v4240_v49 = vsel %vm1291_vm0, %v1259_v41, -9e+15  ;;  %vm1200_vm2 = vcmp.gt.f32.partialorder %v1168_v52, 0.0 }
 0x1cf   : > { %v1420_v39 = vrot.slane %v1419_v24, 4  ;;  %v4215_v40 = vsel %vm1291_vm0, %v1275_v38, -9e+15  ;;  %v1232_v12 = vmul.f32 0.2, %v1168_v52  ;;  %vm1201_vm6 = vcmp.gt.f32.partialorder %v1169_v0, 0.0 }
 0x1d0   : > { %v1397_v9 = vsel %vm1354_vm1, %v4215_v40, -inf }
 0x1d1   : > { %v1421_v59 = vmax.f32 %v1419_v24, %v1420_v39  ;;  %v1398_v4 = vmax.f32 %v1396_v54, %v1397_v9  ;;  %v1020_v27 = vpop.permute.xlu0 %1019 }
 0x1d2   : > { %v1161_v51 = vadd.f32 %v3961_v29, %v1020_v27 }
 0x1d3   : > { %v1422_v13 = vrot.slane %v1421_v59, 2  ;;  %v1025_v63 = vpop.permute.xlu1 %1024  ;;  %v1399_v56 = vrot.slane %v1398_v4, 4 }
 0x1d4   : > { %v1162_v42 = vadd.f32 %v3961_v29, %v1025_v63  ;;  %vm1193_vm4 = vcmp.gt.f32.partialorder %v1161_v51, 0.0  ;;  %v1225_v58 = vmul.f32 0.2, %v1161_v51 }
 0x1d5   : > { %v1423_v43 = vmax.f32 %v1421_v59, %v1422_v13  ;;  %v1400_v11 = vmax.f32 %v1398_v4, %v1399_v56 }
 0x1d6   : > { %vm1194_vm5 = vcmp.gt.f32.partialorder %v1162_v42, 0.0  ;;  %v1226_v10 = vmul.f32 0.2, %v1162_v42  ;;  %v1257_v15 = vsel %vm1193_vm4, %v1161_v51, %v1225_v58 }
 0x1d7   : > { %v1424_v25 = vrot.slane %v1423_v43, 1  ;;  %v1401_v29 = vrot.slane %v1400_v11, 2  ;;  %v4236_v36 = vsel %vm1289_vm12, %v1257_v15, -9e+15 }
 0x1d8   : > { %v1258_v24 = vsel %vm1194_vm5, %v1162_v42, %v1226_v10  ;;  %v1350_v37 = vsel %vm1340_vm9, %v4236_v36, -inf  ;;  %v1355_v42 = vsel %vm1354_vm1, %v4240_v49, -inf }
 0x1d9   : > { %v1425_v57 = vmax.f32 %v1423_v43, %v1424_v25  ;;  %v4244_v17 = vsel %vm1290_vm15, %v1258_v24, -9e+15  ;;  %v1402_v39 = vmax.f32 %v1400_v11, %v1401_v29  ;;  %v1351_v38 = vmax.f32 %v1349_v62, %v1350_v37 }
 0x1da   : > { %v1352_v27 = vsel %vm1340_vm9, %v4244_v17, -inf }
 0x1db   : > { %v1450_v1 = vsub.f32 %v3995_v35, %v1425_v57  ;;  %v1451_v54 = vsub.f32 %v4016_v60, %v1425_v57  ;;  %v1452_v61 = vsub.f32 %v4075_v55, %v1425_v57  ;;  %v1453_v59 = vsub.f32 %v4092_v48, %v1425_v57  ;;  %v1070_v11 = vpop.permute.xlu1 %1069 }
 0x1dc   : > { %v1454_v7 = vsub.f32 %v4139_v45, %v1425_v57  ;;  %v1455_v9 = vsub.f32 %v4148_v20, %v1425_v57  ;;  %v1456_v4 = vsub.f32 %v4184_v34, %v1425_v57  ;;  %v1353_v51 = vmax.f32 %v1351_v38, %v1352_v27  ;;  %v5152_v20 = vld [vmem:[#allocation9_spill] sm:$0xff] }
 0x1dd   : > { %v1506_v50 = vmul.f32 1.442695, %v1450_v1  ;;  %v1508_v13 = vmul.f32 1.442695, %v1451_v54  ;;  %v1510_v63 = vmul.f32 1.442695, %v1452_v61  ;;  %v1457_v60 = vsub.f32 %v4180_v33, %v1425_v57  ;;  %v1065_v57 = vpop.permute.xlu0 %1064 }
 0x1de   : > { %v1233_v35 = vmul.f32 0.2, %v1169_v0  ;;  %v1512_v55 = vmul.f32 1.442695, %v1453_v59  ;;  %v1514_v48 = vmul.f32 1.442695, %v1454_v7  ;;  %v1264_v45 = vsel %vm1200_vm2, %v1168_v52, %v1232_v12 }
 0x1df   : > { %3271 = vpow2.f32 %v1506_v50  ;;  %v1403_v14 = vrot.slane %v1402_v39, 1  ;;  %v1369_v34 = vmax.f32 %v5152_v20, %v4230_v5  ;;  %v1516_v56 = vmul.f32 1.442695, %v1455_v9 }
 0x1e0   : > { %3273 = vpow2.f32 %v1508_v13  ;;  %v1518_v43 = vmul.f32 1.442695, %v1456_v4  ;;  %v1356_v58 = vmax.f32 %v1353_v51, %v1355_v42  ;;  %v1265_v33 = vsel %vm1201_vm6, %v1169_v0, %v1233_v35 }
 0x1e1   : > { %3275 = vpow2.f32 %v1510_v63  ;;  %v1404_v41 = vmax.f32 %v1402_v39, %v1403_v14  ;;  %v1520_v10 = vmul.f32 1.442695, %v1457_v60  ;;  %v4266_v52 = vsel %vm1288_vm10, %v1264_v45, -9e+15 }
 0x1e2   : > { %3277 = vpow2.f32 %v1512_v55  ;;  %v1171_v0 = vadd.f32 %v3864_v26, %v1070_v11  ;;  %v1357_v38 = vrot.slane %v1356_v58, 4  ;;  %v1170_v61 = vadd.f32 %v3864_v26, %v1065_v57 }
 0x1e3   : > { %3279 = vpow2.f32 %v1514_v48  ;;  %v1442_v25 = vsub.f32 %v3987_v32, %v1404_v41  ;;  %v1443_v62 = vsub.f32 %v4004_v3, %v1404_v41  ;;  %v1444_v15 = vsub.f32 %v4032_v31, %v1404_v41 }
 0x1e4   : > { %3281 = vpow2.f32 %v1516_v56  ;;  %v1445_v29 = vsub.f32 %v4068_v8, %v1404_v41  ;;  %v1446_v24 = vsub.f32 %v4154_v23, %v1404_v41  ;;  %v1447_v12 = vsub.f32 %v4164_v2, %v1404_v41 }
 0x1e5   : > { %v4274_v37 = vpop.eup %3271  ;;  %3283 = vpow2.f32 %v1518_v43  ;;  %v1490_v39 = vmul.f32 1.442695, %v1442_v25  ;;  %v1492_v31 = vmul.f32 1.442695, %v1443_v62  ;;  %v1494_v8 = vmul.f32 1.442695, %v1444_v15 }
 0x1e6   : > { %v4277_v32 = vpop.eup %3273  ;;  %3285 = vpow2.f32 %v1520_v10  ;;  %v1585_v3 = vsel %vm1340_vm9, %v4274_v37, 0.0  ;;  %v1496_v54 = vmul.f32 1.442695, %v1445_v29  ;;  %v1448_v7 = vsub.f32 %v4200_v18, %v1404_v41 }
 0x1e7   : > { %v4281_v1 = vpop.eup %3275  ;;  %v1586_v23 = vsel %vm1340_vm9, %v4277_v32, 0.0  ;;  %3287 = vpow2.f32 %v1490_v39  ;;  %v1498_v9 = vmul.f32 1.442695, %v1446_v24  ;;  %v1449_v50 = vsub.f32 %v4215_v40, %v1404_v41 }
 0x1e8   : > { %v4286_v2 = vpop.eup %3277  ;;  %v1587_v59 = vadd.f32 %v1586_v23, %v1585_v3  ;;  %3289 = vpow2.f32 %v1492_v31  ;;  %v1588_v27 = vsel %vm1340_vm9, %v4281_v1, 0.0  ;;  %v1500_v13 = vmul.f32 1.442695, %v1447_v12 }
 0x1e9   : > { %v4289_v4 = vpop.eup %3279  ;;  %3291 = vpow2.f32 %v1494_v8  ;;  %v4298_v26 = vsel %vm1289_vm12, %v1265_v33, -9e+15  ;;  %v1358_v18 = vmax.f32 %v1356_v58, %v1357_v38  ;;  %v1590_v60 = vsel %vm1340_vm9, %v4286_v2, 0.0 }
 0x1ea   : > { %v4294_v63 = vpop.eup %3281  ;;  %v1589_v51 = vadd.f32 %v1588_v27, %v1587_v59  ;;  %3293 = vpow2.f32 %v1496_v54  ;;  %v1370_v55 = vsel %vm1340_vm9, %v4266_v52, -inf  ;;  %vm1203_vm10 = vcmp.gt.f32.partialorder %v1171_v0, 0.0 }
 0x1eb   : > { %v4300_v35 = vpop.eup %3283  ;;  %v1235_v40 = vmul.f32 0.2, %v1171_v0  ;;  %3295 = vpow2.f32 %v1498_v9  ;;  %v1502_v14 = vmul.f32 1.442695, %v1448_v7  ;;  %v1359_v56 = vrot.slane %v1358_v18, 2 }
 0x1ec   : > { %v4306_v48 = vpop.eup %3285  ;;  %v1591_v45 = vadd.f32 %v1590_v60, %v1589_v51  ;;  %v1592_v43 = vsel %vm1340_vm9, %v4289_v4, 0.0  ;;  %3297 = vpow2.f32 %v1500_v13  ;;  %v1504_v41 = vmul.f32 1.442695, %v1449_v50 }
 0x1ed   : > { %v4308_v42 = vpop.eup %3287  ;;  %v1234_v58 = vmul.f32 0.2, %v1170_v61  ;;  %v1360_v25 = vmax.f32 %v1358_v18, %v1359_v56  ;;  %vm1202_vm12 = vcmp.gt.f32.partialorder %v1170_v61, 0.0  ;;  %v1594_v15 = vsel %vm1340_vm9, %v4294_v63, 0.0 }
 0x1ee   : > { %v4312_v11 = vpop.eup %3289  ;;  %v1593_v33 = vadd.f32 %v1592_v43, %v1591_v45  ;;  %v1564_v10 = vsel %vm1340_vm9, %v4308_v42, 0.0  ;;  %v1371_v29 = vmax.f32 %v1369_v34, %v1370_v55  ;;  %v1267_v57 = vsel %vm1203_vm10, %v1171_v0, %v1235_v40 }
 0x1ef   : > { %v4316_v62 = vpop.eup %3291  ;;  %v1565_v24 = vsel %vm1340_vm9, %v4312_v11, 0.0  ;;  %3299 = vpow2.f32 %v1502_v14  ;;  %v1361_v3 = vrot.slane %v1360_v25, 1  ;;  %v1372_v31 = vsel %vm1340_vm9, %v4298_v26, -inf }
 0x1f0   : > { %v4326_v12 = vpop.eup %3293  ;;  %v1595_v39 = vadd.f32 %v1594_v15, %v1593_v33  ;;  %v1566_v38 = vadd.f32 %v1565_v24, %v1564_v10  ;;  %v1596_v8 = vsel %vm1340_vm9, %v4300_v35, 0.0  ;;  %v1567_v5 = vsel %vm1340_vm9, %v4316_v62, 0.0 }
 0x1f1   : > { %v1266_v20 = vsel %vm1202_vm12, %v1170_v61, %v1234_v58  ;;  %v4334_v34 = vpop.eup %3295  ;;  %3301 = vpow2.f32 %v1504_v41  ;;  %v1362_v54 = vmax.f32 %v1360_v25, %v1361_v3  ;;  %v1598_v7 = vsel %vm1354_vm1, %v4306_v48, 0.0 }
 0x1f2   : > { %v1597_v23 = vadd.f32 %v1596_v8, %v1595_v39  ;;  %v1568_v0 = vadd.f32 %v1567_v5, %v1566_v38  ;;  %v4336_v59 = vpop.eup %3297  ;;  %v1569_v9 = vsel %vm1340_vm9, %v4326_v12, 0.0  ;;  %v4344_v27 = vsel %vm1291_vm0, %v1267_v57, -9e+15 }
 0x1f3   : > { %v1373_v50 = vmax.f32 %v1371_v29, %v1372_v31  ;;  %v1426_v51 = vsub.f32 %v4020_v16, %v1362_v54  ;;  %v4349_v18 = vsel %vm1290_vm15, %v1266_v20, -9e+15  ;;  %v1571_v60 = vsel %vm1340_vm9, %v4334_v34, 0.0 }
 0x1f4   : > { %v1599_v61 = vadd.f32 %v1598_v7, %v1597_v23  ;;  %v1570_v13 = vadd.f32 %v1569_v9, %v1568_v0  ;;  %v1427_v55 = vsub.f32 %v4028_v22, %v1362_v54  ;;  %v1428_v40 = vsub.f32 %v4114_v19, %v1362_v54 }
 0x1f5   : > { %v1429_v45 = vsub.f32 %v4196_v53, %v1362_v54  ;;  %v4356_v14 = vpop.eup %3299  ;;  %v1573_v16 = vsel %vm1340_vm9, %v4336_v59, 0.0  ;;  %v1430_v41 = vsub.f32 %v4209_v28, %v1362_v54  ;;  %v1431_v58 = vsub.f32 %v4236_v36, %v1362_v54 }
 0x1f6   : > { %v1600_v56 = vrot.slane %v1599_v61, 4  ;;  %v1572_v43 = vadd.f32 %v1571_v60, %v1570_v13  ;;  %v1458_v33 = vmul.f32 1.442695, %v1426_v51  ;;  %v1460_v10 = vmul.f32 1.442695, %v1427_v55 }
 0x1f7   : > { %v1374_v22 = vsel %vm1340_vm9, %v4349_v18, -inf  ;;  %v4364_v25 = vpop.eup %3301  ;;  %v1462_v15 = vmul.f32 1.442695, %v1428_v40  ;;  %v1464_v29 = vmul.f32 1.442695, %v1429_v45  ;;  %v1575_v24 = vsel %vm1340_vm9, %v4356_v14, 0.0 }
 0x1f8   : > { %v1601_v19 = vadd.f32 %v1600_v56, %v1599_v61  ;;  %v1574_v53 = vadd.f32 %v1573_v16, %v1572_v43  ;;  %v1432_v57 = vsub.f32 %v4244_v17, %v1362_v54  ;;  %3303 = vpow2.f32 %v1458_v33 }
 0x1f9   : > { %v1376_v28 = vsel %vm1354_vm1, %v4344_v27, -inf  ;;  %3305 = vpow2.f32 %v1460_v10  ;;  %v1466_v38 = vmul.f32 1.442695, %v1430_v41  ;;  %v1577_v3 = vsel %vm1354_vm1, %v4364_v25, 0.0 }
 0x1fa   : > { %v1602_v36 = vrot.slane %v1601_v19, 2  ;;  %v1576_v39 = vadd.f32 %v1575_v24, %v1574_v53  ;;  %v1433_v31 = vsub.f32 %v4240_v49, %v1362_v54  ;;  %3307 = vpow2.f32 %v1462_v15 }
 0x1fb   : > { %v1375_v8 = vmax.f32 %v1373_v50, %v1374_v22  ;;  %3309 = vpow2.f32 %v1464_v29  ;;  %v1468_v23 = vmul.f32 1.442695, %v1431_v58  ;;  %v1470_v17 = vmul.f32 1.442695, %v1432_v57 }
 0x1fc   : > { %v1603_v5 = vadd.f32 %v1602_v36, %v1601_v19  ;;  %v1578_v20 = vadd.f32 %v1577_v3, %v1576_v39  ;;  %3311 = vpow2.f32 %v1466_v38  ;;  %v1472_v13 = vmul.f32 1.442695, %v1433_v31 }
 0x1fd   : > { %v1377_v0 = vmax.f32 %v1375_v8, %v1376_v28  ;;  %3313 = vpow2.f32 %v1468_v23  ;;  %vm2343_vm15 = vcmask 1041408  }
 0x1fe   : > { %v1604_v7 = vrot.slane %v1603_v5, 1  ;;  %v1579_v9 = vrot.slane %v1578_v20, 4  ;;  %v4374_v61 = vpop.eup %3303  ;;  %3315 = vpow2.f32 %v1470_v17 }
 0x1ff   : > { %v1378_v51 = vrot.slane %v1377_v0, 4  ;;  %v4376_v60 = vpop.eup %3305  ;;  %v1522_v49 = vsel %vm1340_vm9, %v4374_v61, 0.0 }
 0x200   : > { %v1605_v55 = vadd.f32 %v1604_v7, %v1603_v5  ;;  %v1580_v40 = vadd.f32 %v1579_v9, %v1578_v20  ;;  %v4380_v54 = vpop.eup %3307  ;;  %v1523_v50 = vsel %vm1340_vm9, %v4376_v60, 0.0  ;;  %v5154_v9 = vld [vmem:[#allocation8_spill] sm:$0xff] }
 0x201   : > { %v1379_v45 = vmax.f32 %v1377_v0, %v1378_v51  ;;  %v4384_v56 = vpop.eup %3309  ;;  %v1524_v16 = vadd.f32 %v1523_v50, %v1522_v49  ;;  %v1525_v41 = vsel %vm1340_vm9, %v4380_v54, 0.0  ;;  %v5153_v0 = vld [vmem:[#allocation6_spill] sm:$0xff]  ;;  %v5155_v51 = vld [vmem:[#allocation7_spill] sm:$0xff]  ;;  %v5156_v49 = vld [vmem:[#allocation5_spill] sm:$0xff] }
 0x202   : > { %3317 = vrcp.f32 %v1605_v55  ;;  %v1581_v43 = vrot.slane %v1580_v40, 2  ;;  %v4388_v33 = vpop.eup %3311  ;;  %v1527_v19 = vsel %vm1340_vm9, %v4384_v56, 0.0  ;;  %v4413_v50 = vmul.f32 0.8, %v5156_v49 }
 0x203   : > { %3319 = vpow2.f32 %v1472_v13  ;;  %v1380_v58 = vrot.slane %v1379_v45, 2  ;;  %v1526_v22 = vadd.f32 %v1525_v41, %v1524_v16  ;;  %v4392_v15 = vpop.eup %3313  ;;  %v1529_v28 = vsel %vm1340_vm9, %v4388_v33, 0.0 }
 0x204   : > { %v1582_v10 = vadd.f32 %v1581_v43, %v1580_v40  ;;  %v4394_v57 = vpop.eup %3315  ;;  %v1531_v8 = vsel %vm1340_vm9, %v4392_v15, 0.0 }
 0x205   : > { %v1381_v53 = vmax.f32 %v1379_v45, %v1380_v58  ;;  %v1528_v24 = vadd.f32 %v1527_v19, %v1526_v22  ;;  %v1533_v23 = vsel %vm1340_vm9, %v4394_v57, 0.0 }
 0x206   : > { %v1583_v29 = vrot.slane %v1582_v10, 1 }
 0x207   : > { %v1382_v36 = vrot.slane %v1381_v53, 1  ;;  %v1530_v3 = vadd.f32 %v1529_v28, %v1528_v24 }
 0x208   : > { %v4398_v39 = vpop.eup %3317  ;;  %v1584_v38 = vadd.f32 %v1583_v29, %v1582_v10 }
 0x209   : > { %v4400_v31 = vpop.eup %3319  ;;  %v1383_v5 = vmax.f32 %v1381_v53, %v1382_v36  ;;  %v1532_v20 = vadd.f32 %v1531_v8, %v1530_v3  ;;  %v1634_v17 = vmul.f32 %v4398_v39, %v4274_v37  ;;  %v1636_v49 = vmul.f32 %v4398_v39, %v4281_v1 }
 0x20a   : > { %3321 = vrcp.f32 %v1584_v38  ;;  %v1535_v43 = vsel %vm1354_vm1, %v4400_v31, 0.0 }
 0x20b   : > { %v1434_v7 = vsub.f32 %v5153_v0, %v1383_v5  ;;  %v1435_v13 = vsub.f32 %v5154_v9, %v1383_v5  ;;  %v1436_v55 = vsub.f32 %v5155_v51, %v1383_v5  ;;  %v1437_v40 = vsub.f32 %v4224_v46, %v1383_v5 }
 0x20c   : > { %v1534_v45 = vadd.f32 %v1533_v23, %v1532_v20  ;;  %v1438_v16 = vsub.f32 %v4266_v52, %v1383_v5  ;;  %v1439_v22 = vsub.f32 %v4298_v26, %v1383_v5  ;;  %v1674_v53 = vmul.f32 0.2, %v1634_v17 }
 0x20d   : > { %v1474_v41 = vmul.f32 1.442695, %v1434_v7  ;;  %v1476_v58 = vmul.f32 1.442695, %v1435_v13  ;;  %v1478_v37 = vmul.f32 1.442695, %v1436_v55  ;;  %v1635_v46 = vmul.f32 %v4398_v39, %v4277_v32 }
 0x20e   : > { %v1536_v10 = vadd.f32 %v1535_v43, %v1534_v45  ;;  %v1480_v19 = vmul.f32 1.442695, %v1437_v40  ;;  %v1440_v28 = vsub.f32 %v4349_v18, %v1383_v5  ;;  %v1482_v36 = vmul.f32 1.442695, %v1438_v16  ;;  %v3343_v18 = vld [vmem:[%s5097_s1 + $0x8] sm:$0xff] }
 0x20f   : > { %3323 = vpow2.f32 %v1474_v41  ;;  %v1441_v52 = vsub.f32 %v4344_v27, %v1383_v5  ;;  %v4426_v38 = vadd.f32 %v1674_v53, %v4413_v50  ;;  %v1484_v8 = vmul.f32 1.442695, %v1439_v22  ;;  %v3344_v53 = vld [vmem:[%s5097_s1 + $0x10] sm:$0xff] }
 0x210   : > { %v4421_v29 = vpop.eup %3321  ;;  %v1537_v24 = vrot.slane %v1536_v10, 4  ;;  %3325 = vpow2.f32 %v1476_v58  ;;  %v4435_v20 = vmul.f32 0.8, %v3343_v18  ;;  %v1486_v5 = vmul.f32 1.442695, %v1440_v28 }
 0x211   : > { %3327 = vpow2.f32 %v1478_v37  ;;  %v1626_v26 = vmul.f32 %v4421_v29, %v4308_v42  ;;  %3172 = vmatmul.msk.f32.vlgmr.msrb.gmra.mxu3 %vm1340_vm9, %v4426_v38  ;;  %v1675_v23 = vmul.f32 0.2, %v1635_v46  ;;  %v1488_v42 = vmul.f32 1.442695, %v1441_v52  ;;  %1738 = vst.msk [vmem:[%s4535_s27 + $0xc0] sm:$0xff] %vm1340_vm9, %v4426_v38 }
 0x212   : > { %v1538_v3 = vadd.f32 %v1537_v24, %v1536_v10  ;;  %3329 = vpow2.f32 %v1480_v19  ;;  %v1627_v7 = vmul.f32 %v4421_v29, %v4312_v11  ;;  %v1628_v37 = vmul.f32 %v4421_v29, %v4316_v62 }
 0x213   : > { %v1666_v32 = vmul.f32 0.2, %v1626_v26  ;;  %3331 = vpow2.f32 %v1482_v36  ;;  %v4459_v16 = vadd.f32 %v1675_v23, %v4435_v20  ;;  %v4474_v46 = vmul.f32 0.8, %v3344_v53 }
 0x214   : > { %v1539_v27 = vrot.slane %v1538_v3, 2  ;;  %3333 = vpow2.f32 %v1484_v8  ;;  %v1667_v58 = vmul.f32 0.2, %v1627_v7  ;;  %v1676_v28 = vmul.f32 0.2, %v1636_v49 }
 0x215   : > { %v4437_v17 = vpop.eup %3323  ;;  %v4440_v0 = vadd.f32 %v1666_v32, %v4413_v50  ;;  %3335 = vpow2.f32 %v1486_v5  ;;  %v1637_v36 = vmul.f32 %v4398_v39, %v4286_v2  ;;  %v1641_v2 = vmul.f32 %v4398_v39, %v4306_v48  ;;  %1739 = vst.msk [vmem:[%s4535_s27 + $0xc8] sm:$0xff] %vm1340_vm9, %v4459_v16 }
 0x216   : > { %v4444_v9 = vpop.eup %3325  ;;  %v1540_v13 = vadd.f32 %v1539_v27, %v1538_v3  ;;  %v1543_v51 = vsel %vm1340_vm9, %v4437_v17, 0.0  ;;  %3337 = vpow2.f32 %v1488_v42  ;;  %v4483_v26 = vadd.f32 %v1667_v58, %v4435_v20 }
 0x217   : > { %v4448_v55 = vpop.eup %3327  ;;  %v1544_v40 = vsel %vm1340_vm9, %v4444_v9, 0.0  ;;  %3163 = vmatmul.msk.f32.vlgmr.msrb.gmra.mxu2 %vm1340_vm9, %v4440_v0  ;;  %v1668_v3 = vmul.f32 0.2, %v1628_v37  ;;  %v4490_v27 = vmul.f32 0.8, %v4108_v6  ;;  %v1633_v23 = vmul.f32 %v4421_v29, %v4364_v25  ;;  %1730 = vst.msk [vmem:[%s4535_s27 + $0x80] sm:$0xff] %vm1340_vm9, %v4440_v0 }
 0x218   : > { %v4456_v45 = vpop.eup %3329  ;;  %v1541_v11 = vrot.slane %v1540_v13, 1  ;;  %v1545_v43 = vadd.f32 %v1544_v40, %v1543_v51  ;;  %v1546_v41 = vsel %vm1340_vm9, %v4448_v55, 0.0  ;;  %v4501_v7 = vadd.f32 %v1676_v28, %v4474_v46  ;;  %1731 = vst.msk [vmem:[%s4535_s27 + $0x88] sm:$0xff] %vm1340_vm9, %v4483_v26 }
 0x219   : > { %v4465_v10 = vpop.eup %3331  ;;  %v1548_v19 = vsel %vm1340_vm9, %v4456_v45, 0.0  ;;  %3173 = vmatmul.msk.f32.gmra.mxu3 %vm1340_vm9, %v4459_v16  ;;  %v1677_v6 = vmul.f32 0.2, %v1637_v36  ;;  %v4509_v40 = vadd.f32 %v1668_v3, %v4474_v46  ;;  %v1629_v48 = vmul.f32 %v4421_v29, %v4326_v12 }
 0x21a   : > { %v1542_v22 = vadd.f32 %v1541_v11, %v1540_v13  ;;  %v1547_v1 = vadd.f32 %v1546_v41, %v1545_v43  ;;  %v4476_v24 = vpop.eup %3333  ;;  %v1550_v52 = vsel %vm1340_vm9, %v4465_v10, 0.0  ;;  %v4504_v13 = vmul.f32 0.8, %v3978_v21  ;;  %1740 = vst.msk [vmem:[%s4535_s27 + $0xd0] sm:$0xff] %vm1340_vm9, %v4501_v7 }
 0x21b   : > { %v4485_v8 = vpop.eup %3335  ;;  %v1552_v5 = vsel %vm1340_vm9, %v4476_v24, 0.0  ;;  %v1681_v49 = vmul.f32 0.2, %v1641_v2  ;;  %v1638_v21 = vmul.f32 %v4398_v39, %v4289_v4  ;;  %v1673_v41 = vmul.f32 0.2, %v1633_v23  ;;  %1732 = vst.msk [vmem:[%s4535_s27 + $0x90] sm:$0xff] %vm1340_vm9, %v4509_v40 }
 0x21c   : > { %3339 = vrcp.f32 %v1542_v22  ;;  %v1549_v62 = vadd.f32 %v1548_v19, %v1547_v1  ;;  %v4487_v18 = vpop.eup %3337  ;;  %v1554_v51 = vsel %vm1340_vm9, %v4485_v8, 0.0  ;;  %v4524_v19 = vmul.f32 0.8, %v4010_v44 }
 0x21d   : > { %v1556_v43 = vsel %vm1354_vm1, %v4487_v18, 0.0  ;;  %v4528_v4 = vadd.f32 %v1681_v49, %v4490_v27 }
 0x21e   : > { %v1551_v32 = vadd.f32 %v1550_v52, %v1549_v62 }
 0x21f   : > { %3164 = vmatmul.msk.f32.gmra.mxu2 %vm1340_vm9, %v4483_v26  ;;  %1745 = vst.msk [vmem:[%s4535_s27 + $0xf8] sm:$0x3f] %vm1354_vm1, %v4528_v4 }
 0x220   : > { %v1553_v42 = vadd.f32 %v1552_v5, %v1551_v32  ;;  %v4552_v5 = vmul.f32 0.8, %v4060_v30 }
 0x221   : > { %3174 = vmatmul.msk.f32.gmra.mxu3 %vm1340_vm9, %v4501_v7 }
 0x222   : > { %v3340_v11 = vpop.eup %3339  ;;  %v1555_v25 = vadd.f32 %v1554_v51, %v1553_v42  ;;  %v4564_v42 = vadd.f32 %v1677_v6, %v4504_v13  ;;  %v1669_v51 = vmul.f32 0.2, %v1629_v48 }
 0x223   : > { %v1610_v58 = vmul.f32 %v3340_v11, %v4374_v61  ;;  %v1611_v37 = vmul.f32 %v3340_v11, %v4376_v60  ;;  %v1612_v12 = vmul.f32 %v3340_v11, %v4380_v54  ;;  %v1613_v22 = vmul.f32 %v3340_v11, %v4384_v56 }
 0x224   : > { %v1557_v1 = vadd.f32 %v1556_v43, %v1555_v25  ;;  %v1614_v53 = vmul.f32 %v3340_v11, %v4388_v33  ;;  %v1615_v61 = vmul.f32 %v3340_v11, %v4392_v15  ;;  %v4538_v56 = vadd.f32 %v1673_v41, %v4490_v27  ;;  %1741 = vst.msk [vmem:[%s4535_s27 + $0xd8] sm:$0xff] %vm1340_vm9, %v4564_v42 }
 0x225   : > { %v1650_v62 = vmul.f32 0.2, %v1610_v58  ;;  %v1651_v28 = vmul.f32 0.2, %v1611_v37  ;;  %v1652_v36 = vmul.f32 0.2, %v1612_v12  ;;  %v1616_v23 = vmul.f32 %v3340_v11, %v4394_v57 }
 0x226   : > { %v1558_v60 = vrot.slane %v1557_v1, 4  ;;  %v1653_v54 = vmul.f32 0.2, %v1613_v22  ;;  %v1654_v44 = vmul.f32 0.2, %v1614_v53  ;;  %v1617_v30 = vmul.f32 %v3340_v11, %v4400_v31 }
 0x227   : > { %v4541_v33 = vadd.f32 %v1650_v62, %v4413_v50  ;;  %3165 = vmatmul.msk.f32.gmra.mxu2 %vm1340_vm9, %v4509_v40  ;;  %v4546_v15 = vadd.f32 %v1651_v28, %v4435_v20  ;;  %v4549_v52 = vadd.f32 %v1652_v36, %v4474_v46  ;;  %v1655_v3 = vmul.f32 0.2, %v1615_v61  ;;  %1737 = vst.msk [vmem:[%s4535_s27 + $0xb8] sm:$0x3f] %vm1354_vm1, %v4538_v56 }
 0x228   : > { %v1559_v32 = vadd.f32 %v1558_v60, %v1557_v1  ;;  %v4555_v2 = vadd.f32 %v1653_v54, %v4504_v13  ;;  %v4567_v49 = vadd.f32 %v1654_v44, %v4524_v19  ;;  %v4574_v57 = vmul.f32 0.8, %v4088_v47 }
 0x229   : > { %1714 = vst.msk [vmem:[%s4535_s27] sm:$0xff] %vm1340_vm9, %v4541_v33  ;;  %3145 = vmatmul.msk.f32.vlgmr.msrb.gmra.mxu0 %vm1340_vm9, %v4541_v33  ;;  %v4577_v43 = vadd.f32 %v1655_v3, %v4552_v5  ;;  %v1656_v6 = vmul.f32 0.2, %v1616_v23  ;;  %3175 = vmatmul.msk.f32.gmra.mxu3 %vm1340_vm9, %v4564_v42  ;;  %v1657_v31 = vmul.f32 0.2, %v1617_v30  ;;  %v4591_v11 = vadd.f32 %v1669_v51, %v4504_v13 }
 0x22a   : > { %v1560_v25 = vrot.slane %v1559_v32, 2  ;;  %1715 = vst.msk [vmem:[%s4535_s27 + $0x8] sm:$0xff] %vm1340_vm9, %v4546_v15  ;;  %v1678_v41 = vmul.f32 0.2, %v1638_v21  ;;  %v1630_v58 = vmul.f32 %v4421_v29, %v4334_v34  ;;  %v1639_v34 = vmul.f32 %v4398_v39, %v4294_v63 }
 0x22b   : > { %1716 = vst.msk [vmem:[%s4535_s27 + $0x10] sm:$0xff] %vm1340_vm9, %v4549_v52  ;;  %v4588_v47 = vadd.f32 %v1656_v6, %v4574_v57  ;;  %v4599_v37 = vadd.f32 %v1657_v31, %v4490_v27  ;;  %v1631_v62 = vmul.f32 %v4421_v29, %v4336_v59  ;;  %v1640_v60 = vmul.f32 %v4398_v39, %v4300_v35 }
 0x22c   : > { %v1561_v48 = vadd.f32 %v1560_v25, %v1559_v32  ;;  %1717 = vst.msk [vmem:[%s4535_s27 + $0x18] sm:$0xff] %vm1340_vm9, %v4555_v2  ;;  %v4617_v22 = vadd.f32 %v1678_v41, %v4524_v19  ;;  %v1670_v1 = vmul.f32 0.2, %v1630_v58  ;;  %v1679_v53 = vmul.f32 0.2, %v1639_v34 }
 0x22d   : > { %1718 = vst.msk [vmem:[%s4535_s27 + $0x20] sm:$0xff] %vm1340_vm9, %v4567_v49  ;;  %v1671_v61 = vmul.f32 0.2, %v1631_v62 }
 0x22e   : > { %v1562_v12 = vrot.slane %v1561_v48, 1  ;;  %1719 = vst.msk [vmem:[%s4535_s27 + $0x28] sm:$0xff] %vm1340_vm9, %v4577_v43  ;;  %v4624_v63 = vadd.f32 %v1670_v1, %v4524_v19  ;;  %v4629_v36 = vadd.f32 %v1679_v53, %v4552_v5 }
 0x22f   : > { %3166 = vmatmul.msk.f32.gmra.mxu2 %vm1340_vm9, %v4591_v11  ;;  %1720 = vst.msk [vmem:[%s4535_s27 + $0x30] sm:$0xff] %vm1340_vm9, %v4588_v47 }
 0x230   : > { %v1563_v21 = vadd.f32 %v1562_v12, %v1561_v48  ;;  %1721 = vst.msk [vmem:[%s4535_s27 + $0x38] sm:$0x3f] %vm1354_vm1, %v4599_v37 }
 0x231   : > { %3146 = vmatmul.msk.f32.gmra.mxu0 %vm1340_vm9, %v4546_v15  ;;  %3176 = vmatmul.msk.f32.gmra.mxu3 %vm1340_vm9, %v4617_v22  ;;  %1733 = vst.msk [vmem:[%s4535_s27 + $0x98] sm:$0xff] %vm1340_vm9, %v4591_v11 }
 0x232   : > { %3341 = vrcp.f32 %v1563_v21  ;;  %1734 = vst.msk [vmem:[%s4535_s27 + $0xa0] sm:$0xff] %vm1340_vm9, %v4624_v63 }
 0x233   : > { %1742 = vst.msk [vmem:[%s4535_s27 + $0xe0] sm:$0xff] %vm1340_vm9, %v4617_v22 }
 0x234   : > { %1743 = vst.msk [vmem:[%s4535_s27 + $0xe8] sm:$0xff] %vm1340_vm9, %v4629_v36 }
 0x237   : > { %3167 = vmatmul.msk.f32.gmra.mxu2 %vm1340_vm9, %v4624_v63 }
 0x238   : > { %v3342_v28 = vpop.eup %3341 }
 0x239   : > { %v1618_v54 = vmul.f32 %v3342_v28, %v4437_v17  ;;  %v1619_v44 = vmul.f32 %v3342_v28, %v4444_v9  ;;  %3147 = vmatmul.msk.f32.gmra.mxu0 %vm1340_vm9, %v4549_v52  ;;  %v1620_v59 = vmul.f32 %v3342_v28, %v4448_v55  ;;  %v1621_v3 = vmul.f32 %v3342_v28, %v4456_v45 }
 0x23a   : > { %v1622_v32 = vmul.f32 %v3342_v28, %v4465_v10  ;;  %v1623_v23 = vmul.f32 %v3342_v28, %v4476_v24  ;;  %v1624_v51 = vmul.f32 %v3342_v28, %v4485_v8  ;;  %v1625_v35 = vmul.f32 %v3342_v28, %v4487_v18  ;;  %3177 = vmatmul.msk.f32.gmra.mxu3 %vm1340_vm9, %v4629_v36 }
 0x23b   : > { %v1658_v39 = vmul.f32 0.2, %v1618_v54  ;;  %v1659_v17 = vmul.f32 0.2, %v1619_v44  ;;  %v1632_v9 = vmul.f32 %v4421_v29, %v4356_v14  ;;  %v1660_v45 = vmul.f32 0.2, %v1620_v59 }
 0x23c   : > { %v4651_v10 = vadd.f32 %v1671_v61, %v4552_v5  ;;  %v1680_v24 = vmul.f32 0.2, %v1640_v60  ;;  %v1665_v18 = vmul.f32 0.2, %v1625_v35  ;;  %v1661_v14 = vmul.f32 0.2, %v1621_v3 }
 0x23d   : > { %v4648_v55 = vadd.f32 %v1658_v39, %v4413_v50  ;;  %v4654_v8 = vadd.f32 %v1659_v17, %v4435_v20  ;;  %v4673_v29 = vadd.f32 %v1660_v45, %v4474_v46  ;;  %v1672_v30 = vmul.f32 0.2, %v1632_v9 }
 0x23e   : > { %v4667_v50 = vadd.f32 %v1665_v18, %v4490_v27  ;;  %v4678_v20 = vadd.f32 %v1680_v24, %v4574_v57  ;;  %v1662_v46 = vmul.f32 0.2, %v1622_v32  ;;  %v4692_v27 = vadd.f32 %v1661_v14, %v4504_v13  ;;  %1735 = vst.msk [vmem:[%s4535_s27 + $0xa8] sm:$0xff] %vm1340_vm9, %v4651_v10 }
 0x23f   : > { %1722 = vst.msk [vmem:[%s4535_s27 + $0x40] sm:$0xff] %vm1340_vm9, %v4648_v55  ;;  %3154 = vmatmul.msk.f32.vlgmr.msrb.gmra.mxu1 %vm1340_vm9, %v4648_v55  ;;  %3168 = vmatmul.msk.f32.gmra.mxu2 %vm1340_vm9, %v4651_v10  ;;  %v4698_v25 = vadd.f32 %v1672_v30, %v4574_v57  ;;  %v1663_v6 = vmul.f32 0.2, %v1623_v23  ;;  %v1664_v31 = vmul.f32 0.2, %v1624_v51 }
 0x240   : > { %1723 = vst.msk [vmem:[%s4535_s27 + $0x48] sm:$0xff] %vm1340_vm9, %v4654_v8  ;;  %v4711_v13 = vadd.f32 %v1662_v46, %v4524_v19 }
 0x241   : > { %3148 = vmatmul.msk.f32.gmra.mxu0 %vm1340_vm9, %v4555_v2  ;;  %1724 = vst.msk [vmem:[%s4535_s27 + $0x50] sm:$0xff] %vm1340_vm9, %v4673_v29  ;;  %v4725_v19 = vadd.f32 %v1663_v6, %v4552_v5  ;;  %v4739_v48 = vadd.f32 %v1664_v31, %v4574_v57  ;;  %v1748_v5 = vld [vmem:[%s5102_s6 + $0x8] sm:$0x3]  ;;  %v1747_v57 = vld [vmem:[%s5102_s6] sm:$0xff] }
 0x242   : > { %3178 = vmatmul.msk.f32.gmra.mxu3 %vm1340_vm9, %v4678_v20  ;;  %1725 = vst.msk [vmem:[%s4535_s27 + $0x58] sm:$0xff] %vm1340_vm9, %v4692_v27  ;;  %3198 = vmatpush.msk.msra.mxu2 %vm2343_vm15, %v1748_v5 }
 0x243   : > { %1726 = vst.msk [vmem:[%s4535_s27 + $0x60] sm:$0xff] %vm1340_vm9, %v4711_v13  ;;  %3207 = vmatpush.msk.msra.mxu3 %vm2343_vm15, %v1748_v5  ;;  %3189 = vmatpush.msk.msra.mxu1 %vm2343_vm15, %v1748_v5 }
 0x244   : > { %1727 = vst.msk [vmem:[%s4535_s27 + $0x68] sm:$0xff] %vm1340_vm9, %v4725_v19  ;;  %3180 = vmatpush.msk.msra.mxu0 %vm2343_vm15, %v1748_v5  ;;  %2492 = vmatpush.msra.mxu2 %v1747_v57 }
 0x245   : > { %1728 = vst.msk [vmem:[%s4535_s27 + $0x70] sm:$0xff] %vm1340_vm9, %v4739_v48  ;;  %2557 = vmatpush.msra.mxu3 %v1747_v57  ;;  %2427 = vmatpush.msra.mxu1 %v1747_v57 }
 0x246   : > { %1736 = vst.msk [vmem:[%s4535_s27 + $0xb0] sm:$0xff] %vm1340_vm9, %v4698_v25  ;;  %2362 = vmatpush.msra.mxu0 %v1747_v57 }
 0x247   : > { %3155 = vmatmul.msk.f32.gmra.mxu1 %vm1340_vm9, %v4654_v8  ;;  %3169 = vmatmul.msk.f32.gmra.mxu2 %vm1340_vm9, %v4698_v25  ;;  %1744 = vst.msk [vmem:[%s4535_s27 + $0xf0] sm:$0xff] %vm1340_vm9, %v4678_v20 }
 0x248   : > { %1729 = vst.msk [vmem:[%s4535_s27 + $0x78] sm:$0x3f] %vm1354_vm1, %v4667_v50  ;;  %vm2285_vm1 = vcmask 80896  }
 0x249   : > { %3149 = vmatmul.msk.f32.gmra.mxu0 %vm1340_vm9, %v4567_v49 }
 0x24a   : > { %3179 = vmatmul.msk.f32.gmra.mxu3 %vm1340_vm9, %v4528_v4 }
 0x24f   : > { %3156 = vmatmul.msk.f32.gmra.mxu1 %vm1340_vm9, %v4673_v29  ;;  %3170 = vmatmul.msk.f32.gmra.mxu2 %vm1340_vm9, %v4538_v56 }
 0x251   : > { %3150 = vmatmul.msk.f32.gmra.mxu0 %vm1340_vm9, %v4577_v43 }
 0x257   : > { %3157 = vmatmul.msk.f32.gmra.mxu1 %vm1340_vm9, %v4692_v27 }
 0x259   : > { %3151 = vmatmul.msk.f32.gmra.mxu0 %vm1340_vm9, %v4588_v47 }
 0x25f   : > { %3158 = vmatmul.msk.f32.gmra.mxu1 %vm1340_vm9, %v4711_v13 }
 0x261   : > { %3152 = vmatmul.msk.f32.gmra.mxu0 %vm1340_vm9, %v4599_v37 }
 0x267   : > { %3159 = vmatmul.msk.f32.gmra.mxu1 %vm1340_vm9, %v4725_v19 }
 0x26f   : > { %3160 = vmatmul.msk.f32.gmra.mxu1 %vm1340_vm9, %v4739_v48 }
 0x277   : > { %3161 = vmatmul.msk.f32.gmra.mxu1 %vm1340_vm9, %v4667_v50 }
 0x294   : > { %v2165_v41 = vpop.f32.mrf.mxu3 }
 0x295   : > { %vm2213_vm0 = vcmp.gt.f32.partialorder %v2165_v41, 0.0  ;;  %v2245_v58 = vmul.f32 0.2, %v2165_v41 }
 0x297   : > { %v4794_v12 = vsel %vm2213_vm0, %v2165_v41, %v2245_v58 }
 0x298   : > { %3208 = vmatmul.msk.f32.vlgmr.msra.gmra.mxu3 %vm2285_vm1, %v4794_v12  ;;  %2311 = vst.msk [vmem:[%s4814_s15 + $0xc0] sm:$0xff] %vm2285_vm1, %v4794_v12 }
 0x29a   : > { %v2097_v21 = vpop.f32.mrf.mxu2 }
 0x29b   : > { %vm2205_vm8 = vcmp.gt.f32.partialorder %v2097_v21, 0.0  ;;  %v2237_v34 = vmul.f32 0.2, %v2097_v21 }
 0x29c   : > { %v2168_v53 = vpop.f32.mrf.mxu3 }
 0x29d   : > { %v4798_v1 = vsel %vm2205_vm8, %v2097_v21, %v2237_v34  ;;  %vm2214_vm11 = vcmp.gt.f32.partialorder %v2168_v53, 0.0  ;;  %v2246_v62 = vmul.f32 0.2, %v2168_v53 }
 0x29e   : > { %3199 = vmatmul.msk.f32.vlgmr.msra.gmra.mxu2 %vm2285_vm1, %v4798_v1  ;;  %2303 = vst.msk [vmem:[%s4814_s15 + $0x80] sm:$0xff] %vm2285_vm1, %v4798_v1 }
 0x29f   : > { %v4802_v28 = vsel %vm2214_vm11, %v2168_v53, %v2246_v62 }
 0x2a0   : > { %3209 = vmatmul.msk.f32.gmra.mxu3 %vm2285_vm1, %v4802_v28  ;;  %2312 = vst.msk [vmem:[%s4814_s15 + $0xc8] sm:$0xff] %vm2285_vm1, %v4802_v28 }
 0x2a2   : > { %v2100_v61 = vpop.f32.mrf.mxu2 }
 0x2a3   : > { %vm2206_vm13 = vcmp.gt.f32.partialorder %v2100_v61, 0.0  ;;  %v2238_v60 = vmul.f32 0.2, %v2100_v61 }
 0x2a4   : > { %v2171_v59 = vpop.f32.mrf.mxu3 }
 0x2a5   : > { %v4806_v54 = vsel %vm2206_vm13, %v2100_v61, %v2238_v60  ;;  %vm2215_vm7 = vcmp.gt.f32.partialorder %v2171_v59, 0.0  ;;  %v2247_v32 = vmul.f32 0.2, %v2171_v59 }
 0x2a6   : > { %v1961_v44 = vpop.f32.mrf.mxu0  ;;  %3200 = vmatmul.msk.f32.gmra.mxu2 %vm2285_vm1, %v4806_v54  ;;  %2304 = vst.msk [vmem:[%s4814_s15 + $0x88] sm:$0xff] %vm2285_vm1, %v4806_v54 }
 0x2a7   : > { %vm2189_vm14 = vcmp.gt.f32.partialorder %v1961_v44, 0.0  ;;  %v2221_v3 = vmul.f32 0.2, %v1961_v44  ;;  %v4816_v51 = vsel %vm2215_vm7, %v2171_v59, %v2247_v32 }
 0x2a8   : > { %3210 = vmatmul.msk.f32.gmra.mxu3 %vm2285_vm1, %v4816_v51  ;;  %2313 = vst.msk [vmem:[%s4814_s15 + $0xd0] sm:$0xff] %vm2285_vm1, %v4816_v51 }
 0x2a9   : > { %v2253_v23 = vsel %vm2189_vm14, %v1961_v44, %v2221_v3 }
 0x2aa   : > { %2286 = vst.msk [vmem:[%s4814_s15] sm:$0xff] %vm2285_vm1, %v2253_v23  ;;  %3181 = vmatmul.msk.f32.vlgmr.msra.gmra.mxu0 %vm2285_vm1, %v2253_v23  ;;  %v2103_v35 = vpop.f32.mrf.mxu2 }
 0x2ab   : > { %vm2207_vm4 = vcmp.gt.f32.partialorder %v2103_v35, 0.0  ;;  %v2239_v39 = vmul.f32 0.2, %v2103_v35 }
 0x2ac   : > { %v2174_v45 = vpop.f32.mrf.mxu3 }
 0x2ad   : > { %v4823_v17 = vsel %vm2207_vm4, %v2103_v35, %v2239_v39  ;;  %vm2216_vm2 = vcmp.gt.f32.partialorder %v2174_v45, 0.0  ;;  %v2248_v18 = vmul.f32 0.2, %v2174_v45 }
 0x2ae   : > { %v1964_v9 = vpop.f32.mrf.mxu0  ;;  %3201 = vmatmul.msk.f32.gmra.mxu2 %vm2285_vm1, %v4823_v17  ;;  %2305 = vst.msk [vmem:[%s4814_s15 + $0x90] sm:$0xff] %vm2285_vm1, %v4823_v17 }
 0x2af   : > { %vm2190_vm5 = vcmp.gt.f32.partialorder %v1964_v9, 0.0  ;;  %v2222_v24 = vmul.f32 0.2, %v1964_v9  ;;  %v4827_v30 = vsel %vm2216_vm2, %v2174_v45, %v2248_v18 }
 0x2b0   : > { %3211 = vmatmul.msk.f32.gmra.mxu3 %vm2285_vm1, %v4827_v30  ;;  %2314 = vst.msk [vmem:[%s4814_s15 + $0xd8] sm:$0xff] %vm2285_vm1, %v4827_v30 }
 0x2b1   : > { %v2254_v14 = vsel %vm2190_vm5, %v1964_v9, %v2222_v24 }
 0x2b2   : > { %2287 = vst.msk [vmem:[%s4814_s15 + $0x8] sm:$0xff] %vm2285_vm1, %v2254_v14  ;;  %3182 = vmatmul.msk.f32.gmra.mxu0 %vm2285_vm1, %v2254_v14  ;;  %v2106_v46 = vpop.f32.mrf.mxu2 }
 0x2b3   : > { %vm2208_vm6 = vcmp.gt.f32.partialorder %v2106_v46, 0.0  ;;  %v2240_v6 = vmul.f32 0.2, %v2106_v46 }
 0x2b4   : > { %v2177_v57 = vpop.f32.mrf.mxu3 }
 0x2b5   : > { %v4834_v31 = vsel %vm2208_vm6, %v2106_v46, %v2240_v6  ;;  %vm2217_vm12 = vcmp.gt.f32.partialorder %v2177_v57, 0.0  ;;  %v2249_v58 = vmul.f32 0.2, %v2177_v57 }
 0x2b6   : > { %v1967_v5 = vpop.f32.mrf.mxu0  ;;  %3202 = vmatmul.msk.f32.gmra.mxu2 %vm2285_vm1, %v4834_v31  ;;  %2306 = vst.msk [vmem:[%s4814_s15 + $0x98] sm:$0xff] %vm2285_vm1, %v4834_v31 }
 0x2b7   : > { %vm2191_vm10 = vcmp.gt.f32.partialorder %v1967_v5, 0.0  ;;  %v2223_v41 = vmul.f32 0.2, %v1967_v5  ;;  %v4838_v34 = vsel %vm2217_vm12, %v2177_v57, %v2249_v58 }
 0x2b8   : > { %3212 = vmatmul.msk.f32.gmra.mxu3 %vm2285_vm1, %v4838_v34  ;;  %2315 = vst.msk [vmem:[%s4814_s15 + $0xe0] sm:$0xff] %vm2285_vm1, %v4838_v34 }
 0x2b9   : > { %v2255_v21 = vsel %vm2191_vm10, %v1967_v5, %v2223_v41 }
 0x2ba   : > { %2288 = vst.msk [vmem:[%s4814_s15 + $0x10] sm:$0xff] %vm2285_vm1, %v2255_v21  ;;  %3183 = vmatmul.msk.f32.gmra.mxu0 %vm2285_vm1, %v2255_v21  ;;  %v2109_v53 = vpop.f32.mrf.mxu2 }
 0x2bb   : > { %vm2209_vm15 = vcmp.gt.f32.partialorder %v2109_v53, 0.0  ;;  %v2241_v62 = vmul.f32 0.2, %v2109_v53 }
 0x2bc   : > { %v2029_v61 = vpop.f32.mrf.mxu1 }
 0x2bd   : > { %vm2197_vm0 = vcmp.gt.f32.partialorder %v2029_v61, 0.0  ;;  %v2229_v60 = vmul.f32 0.2, %v2029_v61  ;;  %v4845_v44 = vsel %vm2209_vm15, %v2109_v53, %v2241_v62  ;;  %v2180_v3 = vpop.f32.mrf.mxu3 }
 0x2be   : > { %v1970_v59 = vpop.f32.mrf.mxu0  ;;  %3203 = vmatmul.msk.f32.gmra.mxu2 %vm2285_vm1, %v4845_v44  ;;  %vm2218_vm11 = vcmp.gt.f32.partialorder %v2180_v3, 0.0  ;;  %v2250_v35 = vmul.f32 0.2, %v2180_v3  ;;  %2307 = vst.msk [vmem:[%s4814_s15 + $0xa0] sm:$0xff] %vm2285_vm1, %v4845_v44 }
 0x2bf   : > { %v2261_v32 = vsel %vm2197_vm0, %v2029_v61, %v2229_v60  ;;  %vm2192_vm8 = vcmp.gt.f32.partialorder %v1970_v59, 0.0  ;;  %v2224_v23 = vmul.f32 0.2, %v1970_v59 }
 0x2c0   : > { %2295 = vst.msk [vmem:[%s4814_s15 + $0x40] sm:$0xff] %vm2285_vm1, %v2261_v32  ;;  %3190 = vmatmul.msk.f32.vlgmr.msra.gmra.mxu1 %vm2285_vm1, %v2261_v32  ;;  %v4859_v9 = vsel %vm2218_vm11, %v2180_v3, %v2250_v35 }
 0x2c1   : > { %v2256_v39 = vsel %vm2192_vm8, %v1970_v59, %v2224_v23  ;;  %3213 = vmatmul.msk.f32.gmra.mxu3 %vm2285_vm1, %v4859_v9  ;;  %2316 = vst.msk [vmem:[%s4814_s15 + $0xe8] sm:$0xff] %vm2285_vm1, %v4859_v9 }
 0x2c2   : > { %3184 = vmatmul.msk.f32.gmra.mxu0 %vm2285_vm1, %v2256_v39  ;;  %v2112_v45 = vpop.f32.mrf.mxu2  ;;  %2289 = vst.msk [vmem:[%s4814_s15 + $0x18] sm:$0xff] %vm2285_vm1, %v2256_v39 }
 0x2c3   : > { %vm2210_vm13 = vcmp.gt.f32.partialorder %v2112_v45, 0.0  ;;  %v2242_v24 = vmul.f32 0.2, %v2112_v45 }
 0x2c4   : > { %v2032_v18 = vpop.f32.mrf.mxu1 }
 0x2c5   : > { %vm2198_vm14 = vcmp.gt.f32.partialorder %v2032_v18, 0.0  ;;  %v2230_v1 = vmul.f32 0.2, %v2032_v18  ;;  %v4865_v14 = vsel %vm2210_vm13, %v2112_v45, %v2242_v24  ;;  %v2183_v46 = vpop.f32.mrf.mxu3  ;;  %vm2293_vm13 = vcmask 78848  }
 0x2c6   : > { %v1973_v12 = vpop.f32.mrf.mxu0  ;;  %3204 = vmatmul.msk.f32.gmra.mxu2 %vm2285_vm1, %v4865_v14  ;;  %vm2219_vm4 = vcmp.gt.f32.partialorder %v2183_v46, 0.0  ;;  %v2251_v57 = vmul.f32 0.2, %v2183_v46  ;;  %2308 = vst.msk [vmem:[%s4814_s15 + $0xa8] sm:$0xff] %vm2285_vm1, %v4865_v14 }
 0x2c7   : > { %v2262_v6 = vsel %vm2198_vm14, %v2032_v18, %v2230_v1  ;;  %vm2193_vm7 = vcmp.gt.f32.partialorder %v1973_v12, 0.0  ;;  %v2225_v5 = vmul.f32 0.2, %v1973_v12 }
 0x2c8   : > { %2296 = vst.msk [vmem:[%s4814_s15 + $0x48] sm:$0xff] %vm2285_vm1, %v2262_v6  ;;  %3191 = vmatmul.msk.f32.gmra.mxu1 %vm2285_vm1, %v2262_v6  ;;  %v4879_v58 = vsel %vm2219_vm4, %v2183_v46, %v2251_v57 }
 0x2c9   : > { %v2257_v41 = vsel %vm2193_vm7, %v1973_v12, %v2225_v5  ;;  %3214 = vmatmul.msk.f32.gmra.mxu3 %vm2285_vm1, %v4879_v58  ;;  %2317 = vst.msk [vmem:[%s4814_s15 + $0xf0] sm:$0xff] %vm2285_vm1, %v4879_v58 }
 0x2ca   : > { %3185 = vmatmul.msk.f32.gmra.mxu0 %vm2285_vm1, %v2257_v41  ;;  %v2115_v21 = vpop.f32.mrf.mxu2  ;;  %2290 = vst.msk [vmem:[%s4814_s15 + $0x20] sm:$0xff] %vm2285_vm1, %v2257_v41 }
 0x2cb   : > { %vm2211_vm5 = vcmp.gt.f32.partialorder %v2115_v21, 0.0  ;;  %v2243_v53 = vmul.f32 0.2, %v2115_v21 }
 0x2cc   : > { %v2035_v62 = vpop.f32.mrf.mxu1 }
 0x2cd   : > { %vm2199_vm2 = vcmp.gt.f32.partialorder %v2035_v62, 0.0  ;;  %v2231_v54 = vmul.f32 0.2, %v2035_v62  ;;  %v4885_v61 = vsel %vm2211_vm5, %v2115_v21, %v2243_v53  ;;  %v2186_v60 = vpop.f32.mrf.mxu3 }
 0x2ce   : > { %v1976_v28 = vpop.f32.mrf.mxu0  ;;  %3205 = vmatmul.msk.f32.gmra.mxu2 %vm2285_vm1, %v4885_v61  ;;  %vm2220_vm10 = vcmp.gt.f32.partialorder %v2186_v60, 0.0  ;;  %v2252_v32 = vmul.f32 0.2, %v2186_v60  ;;  %2309 = vst.msk [vmem:[%s4814_s15 + $0xb0] sm:$0xff] %vm2285_vm1, %v4885_v61 }
 0x2cf   : > { %v2263_v59 = vsel %vm2199_vm2, %v2035_v62, %v2231_v54  ;;  %vm2194_vm6 = vcmp.gt.f32.partialorder %v1976_v28, 0.0  ;;  %v2226_v3 = vmul.f32 0.2, %v1976_v28 }
 0x2d0   : > { %2297 = vst.msk [vmem:[%s4814_s15 + $0x50] sm:$0xff] %vm2285_vm1, %v2263_v59  ;;  %3192 = vmatmul.msk.f32.gmra.mxu1 %vm2285_vm1, %v2263_v59  ;;  %v2284_v35 = vsel %vm2220_vm10, %v2186_v60, %v2252_v32 }
 0x2d1   : > { %v2258_v23 = vsel %vm2194_vm6, %v1976_v28, %v2226_v3  ;;  %3215 = vmatmul.msk.f32.gmra.mxu3 %vm2285_vm1, %v2284_v35  ;;  %2318 = vst.msk [vmem:[%s4814_s15 + $0xf8] sm:$0x3f] %vm2293_vm13, %v2284_v35 }
 0x2d2   : > { %3186 = vmatmul.msk.f32.gmra.mxu0 %vm2285_vm1, %v2258_v23  ;;  %v2118_v39 = vpop.f32.mrf.mxu2  ;;  %2291 = vst.msk [vmem:[%s4814_s15 + $0x28] sm:$0xff] %vm2285_vm1, %v2258_v23 }
 0x2d3   : > { %vm2212_vm12 = vcmp.gt.f32.partialorder %v2118_v39, 0.0  ;;  %v2244_v45 = vmul.f32 0.2, %v2118_v39 }
 0x2d4   : > { %v2038_v24 = vpop.f32.mrf.mxu1 }
 0x2d5   : > { %vm2200_vm15 = vcmp.gt.f32.partialorder %v2038_v24, 0.0  ;;  %v2232_v17 = vmul.f32 0.2, %v2038_v24  ;;  %v2276_v18 = vsel %vm2212_vm12, %v2118_v39, %v2244_v45 }
 0x2d6   : > { %v1979_v1 = vpop.f32.mrf.mxu0  ;;  %3206 = vmatmul.msk.f32.gmra.mxu2 %vm2285_vm1, %v2276_v18  ;;  %2310 = vst.msk [vmem:[%s4814_s15 + $0xb8] sm:$0x3f] %vm2293_vm13, %v2276_v18 }
 0x2d7   : > { %v2264_v51 = vsel %vm2200_vm15, %v2038_v24, %v2232_v17  ;;  %vm2195_vm0 = vcmp.gt.f32.partialorder %v1979_v1, 0.0  ;;  %v2227_v12 = vmul.f32 0.2, %v1979_v1 }
 0x2d8   : > { %2298 = vst.msk [vmem:[%s4814_s15 + $0x58] sm:$0xff] %vm2285_vm1, %v2264_v51  ;;  %3193 = vmatmul.msk.f32.gmra.mxu1 %vm2285_vm1, %v2264_v51 }
 0x2d9   : > { %v2259_v46 = vsel %vm2195_vm0, %v1979_v1, %v2227_v12 }
 0x2da   : > { %3187 = vmatmul.msk.f32.gmra.mxu0 %vm2285_vm1, %v2259_v46  ;;  %2292 = vst.msk [vmem:[%s4814_s15 + $0x30] sm:$0xff] %vm2285_vm1, %v2259_v46 }
 0x2dc   : > { %v2041_v6 = vpop.f32.mrf.mxu1 }
 0x2dd   : > { %vm2201_vm8 = vcmp.gt.f32.partialorder %v2041_v6, 0.0  ;;  %v2233_v5 = vmul.f32 0.2, %v2041_v6 }
 0x2de   : > { %v1982_v57 = vpop.f32.mrf.mxu0 }
 0x2df   : > { %v2265_v41 = vsel %vm2201_vm8, %v2041_v6, %v2233_v5  ;;  %vm2196_vm11 = vcmp.gt.f32.partialorder %v1982_v57, 0.0  ;;  %v2228_v21 = vmul.f32 0.2, %v1982_v57 }
 0x2e0   : > { %2299 = vst.msk [vmem:[%s4814_s15 + $0x60] sm:$0xff] %vm2285_vm1, %v2265_v41  ;;  %3194 = vmatmul.msk.f32.gmra.mxu1 %vm2285_vm1, %v2265_v41 }
 0x2e1   : > { %v2260_v30 = vsel %vm2196_vm11, %v1982_v57, %v2228_v21 }
 0x2e2   : > { %3188 = vmatmul.msk.f32.gmra.mxu0 %vm2285_vm1, %v2260_v30  ;;  %2294 = vst.msk [vmem:[%s4814_s15 + $0x38] sm:$0x3f] %vm2293_vm13, %v2260_v30 }
 0x2e4   : > { %v2044_v31 = vpop.f32.mrf.mxu1 }
 0x2e5   : > { %vm2202_vm14 = vcmp.gt.f32.partialorder %v2044_v31, 0.0  ;;  %v2234_v53 = vmul.f32 0.2, %v2044_v31 }
 0x2e7   : > { %v2266_v62 = vsel %vm2202_vm14, %v2044_v31, %v2234_v53 }
 0x2e8   : > { %2300 = vst.msk [vmem:[%s4814_s15 + $0x68] sm:$0xff] %vm2285_vm1, %v2266_v62  ;;  %3195 = vmatmul.msk.f32.gmra.mxu1 %vm2285_vm1, %v2266_v62 }
 0x2ec   : > { %v2047_v34 = vpop.f32.mrf.mxu1 }
 0x2ed   : > { %vm2203_vm7 = vcmp.gt.f32.partialorder %v2047_v34, 0.0  ;;  %v2235_v44 = vmul.f32 0.2, %v2047_v34 }
 0x2ef   : > { %v2267_v54 = vsel %vm2203_vm7, %v2047_v34, %v2235_v44 }
 0x2f0   : > { %2301 = vst.msk [vmem:[%s4814_s15 + $0x70] sm:$0xff] %vm2285_vm1, %v2267_v54  ;;  %3196 = vmatmul.msk.f32.gmra.mxu1 %vm2285_vm1, %v2267_v54 }
 0x2f4   : > { %v2050_v14 = vpop.f32.mrf.mxu1 }
 0x2f5   : > { %vm2204_vm4 = vcmp.gt.f32.partialorder %v2050_v14, 0.0  ;;  %v2236_v28 = vmul.f32 0.2, %v2050_v14 }
 0x2f7   : > { %v2268_v60 = vsel %vm2204_vm4, %v2050_v14, %v2236_v28 }
 0x2f8   : > { %2302 = vst.msk [vmem:[%s4814_s15 + $0x78] sm:$0x3f] %vm2293_vm13, %v2268_v60  ;;  %3197 = vmatmul.msk.f32.gmra.mxu1 %vm2285_vm1, %v2268_v60  ;;  %vm2855_vm1 = vcmask 121856  }
 0x31b   : > { %v2559_v9 = vpop.f32.mrf.mxu3 }
 0x321   : > { %v2494_v59 = vpop.f32.mrf.mxu2 }
 0x323   : > { %v2562_v3 = vpop.f32.mrf.mxu3 }
 0x327   : > { %v2364_v32 = vpop.f32.mrf.mxu0 }
 0x329   : > { %v2497_v61 = vpop.f32.mrf.mxu2 }
 0x32b   : > { %v2565_v23 = vpop.f32.mrf.mxu3 }
 0x32f   : > { %v2367_v39 = vpop.f32.mrf.mxu0 }
 0x331   : > { %v2500_v58 = vpop.f32.mrf.mxu2 }
 0x333   : > { %v2568_v45 = vpop.f32.mrf.mxu3 }
 0x337   : > { %v2370_v24 = vpop.f32.mrf.mxu0 }
 0x339   : > { %v2503_v17 = vpop.f32.mrf.mxu2 }
 0x33b   : > { %v2571_v51 = vpop.f32.mrf.mxu3 }
 0x33d   : > { %v4952_v1 = vpop.f32.mrf.mxu1 }
 0x33f   : > { %v2373_v12 = vpop.f32.mrf.mxu0 }
 0x341   : > { %v2506_v46 = vpop.f32.mrf.mxu2 }
 0x344   : > { %v2574_v18 = vpop.f32.mrf.mxu3 }
 0x345   : > { %v2432_v6 = vpop.f32.mrf.mxu1 }
 0x347   : > { %v2376_v5 = vpop.f32.mrf.mxu0 }
 0x349   : > { %v2509_v35 = vpop.f32.mrf.mxu2 }
 0x34c   : > { %v2577_v41 = vpop.f32.mrf.mxu3 }
 0x34d   : > { %v2435_v57 = vpop.f32.mrf.mxu1 }
 0x34f   : > { %v2379_v21 = vpop.f32.mrf.mxu0 }
 0x351   : > { %v2512_v30 = vpop.f32.mrf.mxu2 }
 0x354   : > { %v2580_v53 = vpop.f32.mrf.mxu3 }
 0x355   : > { %v2438_v31 = vpop.f32.mrf.mxu1  ;;  %3243 = vmatpush.msk.msrb.mxu3 %vm1940_vm3, %v2580_v53 }
 0x357   : > { %v2382_v62 = vpop.f32.mrf.mxu0  ;;  %2727 = vmatpush.msrb.mxu3 %v2577_v41 }
 0x359   : > { %v2515_v34 = vpop.f32.mrf.mxu2  ;;  %2728 = vmatpush.msrb.mxu3 %v2574_v18 }
 0x35a   : > { %3234 = vmatpush.msk.msrb.mxu2 %vm1940_vm3, %v2515_v34 }
 0x35b   : > { %2729 = vmatpush.msrb.mxu3 %v2571_v51 }
 0x35c   : > { %2683 = vmatpush.msrb.mxu2 %v2512_v30 }
 0x35d   : > { %v2441_v44 = vpop.f32.mrf.mxu1  ;;  %2730 = vmatpush.msrb.mxu3 %v2568_v45 }
 0x35e   : > { %2684 = vmatpush.msrb.mxu2 %v2509_v35 }
 0x35f   : > { %v2385_v54 = vpop.f32.mrf.mxu0  ;;  %2731 = vmatpush.msrb.mxu3 %v2565_v23 }
 0x360   : > { %3216 = vmatpush.msk.msrb.mxu0 %vm1940_vm3, %v2385_v54  ;;  %2685 = vmatpush.msrb.mxu2 %v2506_v46 }
 0x361   : > { %2732 = vmatpush.msrb.mxu3 %v2562_v3 }
 0x362   : > { %2595 = vmatpush.msrb.mxu0 %v2382_v62  ;;  %2686 = vmatpush.msrb.mxu2 %v2503_v17 }
 0x363   : > { %2733 = vmatpush.msrb.mxu3 %v2559_v9 }
 0x364   : > { %2596 = vmatpush.msrb.mxu0 %v2379_v21  ;;  %2687 = vmatpush.msrb.mxu2 %v2500_v58 }
 0x365   : > { %v2444_v14 = vpop.f32.mrf.mxu1  ;;  %3244 = vmatmul.msk.f32.vlgmr.msrb.gmra.mxu3 %vm1340_vm9, %v4426_v38 }
 0x366   : > { %2597 = vmatpush.msrb.mxu0 %v2376_v5  ;;  %2688 = vmatpush.msrb.mxu2 %v2497_v61 }
 0x368   : > { %2598 = vmatpush.msrb.mxu0 %v2373_v12  ;;  %2689 = vmatpush.msrb.mxu2 %v2494_v59 }
 0x369   : > { %3235 = vmatmul.msk.f32.vlgmr.msrb.gmra.mxu2 %vm1340_vm9, %v4440_v0 }
 0x36a   : > { %2599 = vmatpush.msrb.mxu0 %v2370_v24 }
 0x36c   : > { %2600 = vmatpush.msrb.mxu0 %v2367_v39 }
 0x36d   : > { %v2447_v28 = vpop.f32.mrf.mxu1  ;;  %3245 = vmatmul.msk.f32.gmra.mxu3 %vm1340_vm9, %v4459_v16 }
 0x36e   : > { %2601 = vmatpush.msrb.mxu0 %v2364_v32 }
 0x36f   : > { %3217 = vmatmul.msk.f32.vlgmr.msrb.gmra.mxu0 %vm1340_vm9, %v4541_v33 }
 0x371   : > { %3236 = vmatmul.msk.f32.gmra.mxu2 %vm1340_vm9, %v4483_v26 }
 0x375   : > { %v2450_v38 = vpop.f32.mrf.mxu1  ;;  %3246 = vmatmul.msk.f32.gmra.mxu3 %vm1340_vm9, %v4501_v7 }
 0x376   : > { %3225 = vmatpush.msk.msrb.mxu1 %vm1940_vm3, %v2450_v38 }
 0x377   : > { %3218 = vmatmul.msk.f32.gmra.mxu0 %vm1340_vm9, %v4546_v15 }
 0x378   : > { %2639 = vmatpush.msrb.mxu1 %v2447_v28 }
 0x379   : > { %3237 = vmatmul.msk.f32.gmra.mxu2 %vm1340_vm9, %v4509_v40 }
 0x37a   : > { %2640 = vmatpush.msrb.mxu1 %v2444_v14 }
 0x37c   : > { %2641 = vmatpush.msrb.mxu1 %v2441_v44 }
 0x37d   : > { %3247 = vmatmul.msk.f32.gmra.mxu3 %vm1340_vm9, %v4564_v42 }
 0x37e   : > { %2642 = vmatpush.msrb.mxu1 %v2438_v31 }
 0x37f   : > { %3219 = vmatmul.msk.f32.gmra.mxu0 %vm1340_vm9, %v4549_v52 }
 0x380   : > { %2643 = vmatpush.msrb.mxu1 %v2435_v57 }
 0x381   : > { %3238 = vmatmul.msk.f32.gmra.mxu2 %vm1340_vm9, %v4591_v11 }
 0x382   : > { %2644 = vmatpush.msrb.mxu1 %v2432_v6 }
 0x384   : > { %2645 = vmatpush.msrb.mxu1 %v4952_v1 }
 0x385   : > { %3226 = vmatmul.msk.f32.vlgmr.msrb.gmra.mxu1 %vm1340_vm9, %v4648_v55  ;;  %3248 = vmatmul.msk.f32.gmra.mxu3 %vm1340_vm9, %v4617_v22 }
 0x387   : > { %3220 = vmatmul.msk.f32.gmra.mxu0 %vm1340_vm9, %v4555_v2 }
 0x389   : > { %3239 = vmatmul.msk.f32.gmra.mxu2 %vm1340_vm9, %v4624_v63 }
 0x38d   : > { %3227 = vmatmul.msk.f32.gmra.mxu1 %vm1340_vm9, %v4654_v8  ;;  %3249 = vmatmul.msk.f32.gmra.mxu3 %vm1340_vm9, %v4629_v36 }
 0x38f   : > { %3221 = vmatmul.msk.f32.gmra.mxu0 %vm1340_vm9, %v4567_v49 }
 0x391   : > { %3240 = vmatmul.msk.f32.gmra.mxu2 %vm1340_vm9, %v4651_v10 }
 0x395   : > { %3228 = vmatmul.msk.f32.gmra.mxu1 %vm1340_vm9, %v4673_v29  ;;  %3250 = vmatmul.msk.f32.gmra.mxu3 %vm1340_vm9, %v4678_v20 }
 0x397   : > { %3222 = vmatmul.msk.f32.gmra.mxu0 %vm1340_vm9, %v4577_v43 }
 0x399   : > { %3241 = vmatmul.msk.f32.gmra.mxu2 %vm1340_vm9, %v4698_v25 }
 0x39d   : > { %3229 = vmatmul.msk.f32.gmra.mxu1 %vm1340_vm9, %v4692_v27  ;;  %3251 = vmatmul.msk.f32.gmra.mxu3 %vm1340_vm9, %v4528_v4 }
 0x39f   : > { %3223 = vmatmul.msk.f32.gmra.mxu0 %vm1340_vm9, %v4588_v47 }
 0x3a1   : > { %3242 = vmatmul.msk.f32.gmra.mxu2 %vm1340_vm9, %v4538_v56 }
 0x3a5   : > { %3230 = vmatmul.msk.f32.gmra.mxu1 %vm1340_vm9, %v4711_v13 }
 0x3a7   : > { %3224 = vmatmul.msk.f32.gmra.mxu0 %vm1340_vm9, %v4599_v37 }
 0x3ad   : > { %3231 = vmatmul.msk.f32.gmra.mxu1 %vm1340_vm9, %v4725_v19 }
 0x3b5   : > { %3232 = vmatmul.msk.f32.gmra.mxu1 %vm1340_vm9, %v4739_v48 }
 0x3bd   : > { %3233 = vmatmul.msk.f32.gmra.mxu1 %vm1340_vm9, %v4667_v50 }
 0x3e8   : > { %v2735_v40 = vpop.f32.mrf.mxu3 }
 0x3e9   : > { %v2815_v11 = vmul.f32 0.2, %v2735_v40  ;;  %vm2783_vm10 = vcmp.gt.f32.partialorder %v2735_v40, 0.0 }
 0x3eb   : > { %v2847_v50 = vsel %vm2783_vm10, %v2735_v40, %v2815_v11 }
 0x3ec   : > { %v2603_v0 = vpop.f32.mrf.mxu0  ;;  %v2691_v7 = vpop.f32.mrf.mxu2  ;;  %2881 = vst.msk [vmem:[%s5027_s18 + $0xc0] sm:$0xff] %vm2855_vm1, %v2847_v50 }
 0x3ed   : > { %vm2759_vm3 = vcmp.gt.f32.partialorder %v2603_v0, 0.0  ;;  %v2791_v16 = vmul.f32 0.2, %v2603_v0  ;;  %v2807_v43 = vmul.f32 0.2, %v2691_v7  ;;  %vm2775_vm2 = vcmp.gt.f32.partialorder %v2691_v7, 0.0 }
 0x3ef   : > { %v2823_v26 = vsel %vm2759_vm3, %v2603_v0, %v2791_v16  ;;  %v2839_v63 = vsel %vm2775_vm2, %v2691_v7, %v2807_v43 }
 0x3f0   : > { %2856 = vst.msk [vmem:[%s5027_s18] sm:$0xff] %vm2855_vm1, %v2823_v26  ;;  %v2738_v52 = vpop.f32.mrf.mxu3 }
 0x3f1   : > { %2873 = vst.msk [vmem:[%s5027_s18 + $0x80] sm:$0xff] %vm2855_vm1, %v2839_v63  ;;  %v2816_v25 = vmul.f32 0.2, %v2738_v52  ;;  %vm2784_vm8 = vcmp.gt.f32.partialorder %v2738_v52, 0.0 }
 0x3f3   : > { %v2848_v3 = vsel %vm2784_vm8, %v2738_v52, %v2816_v25 }
 0x3f4   : > { %v2606_v4 = vpop.f32.mrf.mxu0  ;;  %v2694_v15 = vpop.f32.mrf.mxu2  ;;  %2882 = vst.msk [vmem:[%s5027_s18 + $0xc8] sm:$0xff] %vm2855_vm1, %v2848_v3 }
 0x3f5   : > { %vm2760_vm5 = vcmp.gt.f32.partialorder %v2606_v4, 0.0  ;;  %v2792_v56 = vmul.f32 0.2, %v2606_v4  ;;  %v2808_v20 = vmul.f32 0.2, %v2694_v15  ;;  %vm2776_vm15 = vcmp.gt.f32.partialorder %v2694_v15, 0.0 }
 0x3f7   : > { %v2824_v33 = vsel %vm2760_vm5, %v2606_v4, %v2792_v56  ;;  %v2840_v19 = vsel %vm2776_vm15, %v2694_v15, %v2808_v20 }
 0x3f8   : > { %2857 = vst.msk [vmem:[%s5027_s18 + $0x8] sm:$0xff] %vm2855_vm1, %v2824_v33  ;;  %v2741_v8 = vpop.f32.mrf.mxu3 }
 0x3f9   : > { %2874 = vst.msk [vmem:[%s5027_s18 + $0x88] sm:$0xff] %vm2855_vm1, %v2840_v19  ;;  %v2817_v58 = vmul.f32 0.2, %v2741_v8  ;;  %vm2785_vm7 = vcmp.gt.f32.partialorder %v2741_v8, 0.0 }
 0x3fb   : > { %v2849_v12 = vsel %vm2785_vm7, %v2741_v8, %v2817_v58 }
 0x3fc   : > { %v2609_v2 = vpop.f32.mrf.mxu0  ;;  %v2697_v22 = vpop.f32.mrf.mxu2  ;;  %2883 = vst.msk [vmem:[%s5027_s18 + $0xd0] sm:$0xff] %vm2855_vm1, %v2849_v12 }
 0x3fd   : > { %vm2761_vm9 = vcmp.gt.f32.partialorder %v2609_v2, 0.0  ;;  %v2793_v42 = vmul.f32 0.2, %v2609_v2  ;;  %v2809_v61 = vmul.f32 0.2, %v2697_v22  ;;  %vm2777_vm13 = vcmp.gt.f32.partialorder %v2697_v22, 0.0 }
 0x3ff   : > { %v2825_v49 = vsel %vm2761_vm9, %v2609_v2, %v2793_v42  ;;  %v2841_v24 = vsel %vm2777_vm13, %v2697_v22, %v2809_v61 }
 0x400   : > { %2858 = vst.msk [vmem:[%s5027_s18 + $0x10] sm:$0xff] %vm2855_vm1, %v2825_v49  ;;  %v2744_v23 = vpop.f32.mrf.mxu3 }
 0x401   : > { %2875 = vst.msk [vmem:[%s5027_s18 + $0x90] sm:$0xff] %vm2855_vm1, %v2841_v24  ;;  %v2818_v57 = vmul.f32 0.2, %v2744_v23  ;;  %vm2786_vm9 = vcmp.gt.f32.partialorder %v2744_v23, 0.0 }
 0x402   : > { %v2647_v47 = vpop.f32.mrf.mxu1 }
 0x403   : > { %vm2767_vm6 = vcmp.gt.f32.partialorder %v2647_v47, 0.0  ;;  %v2799_v37 = vmul.f32 0.2, %v2647_v47  ;;  %v2850_v62 = vsel %vm2786_vm9, %v2744_v23, %v2818_v57 }
 0x404   : > { %v2612_v36 = vpop.f32.mrf.mxu0  ;;  %v2700_v9 = vpop.f32.mrf.mxu2  ;;  %2884 = vst.msk [vmem:[%s5027_s18 + $0xd8] sm:$0xff] %vm2855_vm1, %v2850_v62 }
 0x405   : > { %v2831_v55 = vsel %vm2767_vm6, %v2647_v47, %v2799_v37  ;;  %vm2762_vm12 = vcmp.gt.f32.partialorder %v2612_v36, 0.0  ;;  %v2794_v10 = vmul.f32 0.2, %v2612_v36  ;;  %v2810_v18 = vmul.f32 0.2, %v2700_v9 }
 0x406   : > { %2865 = vst.msk [vmem:[%s5027_s18 + $0x40] sm:$0xff] %vm2855_vm1, %v2831_v55  ;;  %vm2778_vm3 = vcmp.gt.f32.partialorder %v2700_v9, 0.0 }
 0x407   : > { %v2826_v29 = vsel %vm2762_vm12, %v2612_v36, %v2794_v10  ;;  %v2842_v21 = vsel %vm2778_vm3, %v2700_v9, %v2810_v18 }
 0x408   : > { %2859 = vst.msk [vmem:[%s5027_s18 + $0x18] sm:$0xff] %vm2855_vm1, %v2826_v29  ;;  %v2747_v35 = vpop.f32.mrf.mxu3 }
 0x409   : > { %2876 = vst.msk [vmem:[%s5027_s18 + $0x98] sm:$0xff] %vm2855_vm1, %v2842_v21  ;;  %v2819_v28 = vmul.f32 0.2, %v2747_v35  ;;  %vm2787_vm12 = vcmp.gt.f32.partialorder %v2747_v35, 0.0 }
 0x40a   : > { %v2650_v27 = vpop.f32.mrf.mxu1 }
 0x40b   : > { %vm2768_vm0 = vcmp.gt.f32.partialorder %v2650_v27, 0.0  ;;  %v2800_v13 = vmul.f32 0.2, %v2650_v27  ;;  %v2851_v4 = vsel %vm2787_vm12, %v2747_v35, %v2819_v28 }
 0x40c   : > { %v2615_v48 = vpop.f32.mrf.mxu0  ;;  %v2703_v46 = vpop.f32.mrf.mxu2  ;;  %2885 = vst.msk [vmem:[%s5027_s18 + $0xe0] sm:$0xff] %vm2855_vm1, %v2851_v4 }
 0x40d   : > { %v2832_v60 = vsel %vm2768_vm0, %v2650_v27, %v2800_v13  ;;  %vm2763_vm11 = vcmp.gt.f32.partialorder %v2615_v48, 0.0  ;;  %v2795_v59 = vmul.f32 0.2, %v2615_v48  ;;  %v2811_v44 = vmul.f32 0.2, %v2703_v46 }
 0x40e   : > { %2866 = vst.msk [vmem:[%s5027_s18 + $0x48] sm:$0xff] %vm2855_vm1, %v2832_v60  ;;  %vm2779_vm6 = vcmp.gt.f32.partialorder %v2703_v46, 0.0  ;;  %vm2863_vm0 = vcmask 119808  }
 0x40f   : > { %v2827_v32 = vsel %vm2763_vm11, %v2615_v48, %v2795_v59  ;;  %v2843_v0 = vsel %vm2779_vm6, %v2703_v46, %v2811_v44 }
 0x410   : > { %2860 = vst.msk [vmem:[%s5027_s18 + $0x20] sm:$0xff] %vm2855_vm1, %v2827_v32  ;;  %v2750_v16 = vpop.f32.mrf.mxu3 }
 0x411   : > { %2877 = vst.msk [vmem:[%s5027_s18 + $0xa0] sm:$0xff] %vm2855_vm1, %v2843_v0  ;;  %v2820_v52 = vmul.f32 0.2, %v2750_v16  ;;  %vm2788_vm13 = vcmp.gt.f32.partialorder %v2750_v16, 0.0 }
 0x412   : > { %v2653_v39 = vpop.f32.mrf.mxu1 }
 0x413   : > { %vm2769_vm14 = vcmp.gt.f32.partialorder %v2653_v39, 0.0  ;;  %v2801_v45 = vmul.f32 0.2, %v2653_v39  ;;  %v2852_v11 = vsel %vm2788_vm13, %v2750_v16, %v2820_v52 }
 0x414   : > { %v2618_v17 = vpop.f32.mrf.mxu0  ;;  %v2706_v54 = vpop.f32.mrf.mxu2  ;;  %2886 = vst.msk [vmem:[%s5027_s18 + $0xe8] sm:$0xff] %vm2855_vm1, %v2852_v11 }
 0x415   : > { %v2833_v1 = vsel %vm2769_vm14, %v2653_v39, %v2801_v45  ;;  %vm2764_vm4 = vcmp.gt.f32.partialorder %v2618_v17, 0.0  ;;  %v2796_v51 = vmul.f32 0.2, %v2618_v17  ;;  %v2812_v33 = vmul.f32 0.2, %v2706_v54 }
 0x416   : > { %2867 = vst.msk [vmem:[%s5027_s18 + $0x50] sm:$0xff] %vm2855_vm1, %v2833_v1  ;;  %vm2780_vm8 = vcmp.gt.f32.partialorder %v2706_v54, 0.0 }
 0x417   : > { %v2828_v6 = vsel %vm2764_vm4, %v2618_v17, %v2796_v51  ;;  %v2844_v49 = vsel %vm2780_vm8, %v2706_v54, %v2812_v33 }
 0x418   : > { %2861 = vst.msk [vmem:[%s5027_s18 + $0x28] sm:$0xff] %vm2855_vm1, %v2828_v6  ;;  %v2753_v47 = vpop.f32.mrf.mxu3 }
 0x419   : > { %2878 = vst.msk [vmem:[%s5027_s18 + $0xa8] sm:$0xff] %vm2855_vm1, %v2844_v49  ;;  %v2821_v63 = vmul.f32 0.2, %v2753_v47  ;;  %vm2789_vm4 = vcmp.gt.f32.partialorder %v2753_v47, 0.0 }
 0x41a   : > { %v2656_v5 = vpop.f32.mrf.mxu1 }
 0x41b   : > { %vm2770_vm5 = vcmp.gt.f32.partialorder %v2656_v5, 0.0  ;;  %v2802_v41 = vmul.f32 0.2, %v2656_v5  ;;  %v2853_v50 = vsel %vm2789_vm4, %v2753_v47, %v2821_v63 }
 0x41c   : > { %v2621_v30 = vpop.f32.mrf.mxu0  ;;  %v2709_v42 = vpop.f32.mrf.mxu2  ;;  %2887 = vst.msk [vmem:[%s5027_s18 + $0xf0] sm:$0xff] %vm2855_vm1, %v2853_v50 }
 0x41d   : > { %v2834_v31 = vsel %vm2770_vm5, %v2656_v5, %v2802_v41  ;;  %vm2765_vm2 = vcmp.gt.f32.partialorder %v2621_v30, 0.0  ;;  %v2797_v53 = vmul.f32 0.2, %v2621_v30  ;;  %v2813_v37 = vmul.f32 0.2, %v2709_v42 }
 0x41e   : > { %2868 = vst.msk [vmem:[%s5027_s18 + $0x58] sm:$0xff] %vm2855_vm1, %v2834_v31  ;;  %vm2781_vm14 = vcmp.gt.f32.partialorder %v2709_v42, 0.0 }
 0x41f   : > { %v2829_v34 = vsel %vm2765_vm2, %v2621_v30, %v2797_v53  ;;  %v2845_v55 = vsel %vm2781_vm14, %v2709_v42, %v2813_v37 }
 0x420   : > { %2862 = vst.msk [vmem:[%s5027_s18 + $0x30] sm:$0xff] %vm2855_vm1, %v2829_v34  ;;  %v2756_v29 = vpop.f32.mrf.mxu3 }
 0x421   : > { %2879 = vst.msk [vmem:[%s5027_s18 + $0xb0] sm:$0xff] %vm2855_vm1, %v2845_v55  ;;  %v2822_v25 = vmul.f32 0.2, %v2756_v29  ;;  %vm2790_vm9 = vcmp.gt.f32.partialorder %v2756_v29, 0.0 }
 0x422   : > { %v2659_v14 = vpop.f32.mrf.mxu1 }
 0x423   : > { %vm2771_vm10 = vcmp.gt.f32.partialorder %v2659_v14, 0.0  ;;  %v2803_v38 = vmul.f32 0.2, %v2659_v14  ;;  %v2854_v60 = vsel %vm2790_vm9, %v2756_v29, %v2822_v25 }
 0x424   : > { %v2624_v26 = vpop.f32.mrf.mxu0  ;;  %v2712_v8 = vpop.f32.mrf.mxu2  ;;  %2888 = vst.msk [vmem:[%s5027_s18 + $0xf8] sm:$0x3f] %vm2863_vm0, %v2854_v60 }
 0x425   : > { %v2835_v7 = vsel %vm2771_vm10, %v2659_v14, %v2803_v38  ;;  %vm2766_vm15 = vcmp.gt.f32.partialorder %v2624_v26, 0.0  ;;  %v2798_v40 = vmul.f32 0.2, %v2624_v26  ;;  %v2814_v20 = vmul.f32 0.2, %v2712_v8 }
 0x426   : > { %2869 = vst.msk [vmem:[%s5027_s18 + $0x60] sm:$0xff] %vm2855_vm1, %v2835_v7  ;;  %vm2782_vm3 = vcmp.gt.f32.partialorder %v2712_v8, 0.0 }
 0x427   : > { %v2830_v56 = vsel %vm2766_vm15, %v2624_v26, %v2798_v40  ;;  %v2846_v19 = vsel %vm2782_vm3, %v2712_v8, %v2814_v20 }
 0x428   : > { %2864 = vst.msk [vmem:[%s5027_s18 + $0x38] sm:$0x3f] %vm2863_vm0, %v2830_v56 }
 0x429   : > { %2880 = vst.msk [vmem:[%s5027_s18 + $0xb8] sm:$0x3f] %vm2863_vm0, %v2846_v19 }
 0x42a   : > { %v2662_v15 = vpop.f32.mrf.mxu1 }
 0x42b   : > { %vm2772_vm11 = vcmp.gt.f32.partialorder %v2662_v15, 0.0  ;;  %v2804_v2 = vmul.f32 0.2, %v2662_v15 }
 0x42d   : > { %v2836_v43 = vsel %vm2772_vm11, %v2662_v15, %v2804_v2 }
 0x42e   : > { %2870 = vst.msk [vmem:[%s5027_s18 + $0x68] sm:$0xff] %vm2855_vm1, %v2836_v43 }
 0x432   : > { %v2665_v22 = vpop.f32.mrf.mxu1 }
 0x433   : > { %vm2773_vm7 = vcmp.gt.f32.partialorder %v2665_v22, 0.0  ;;  %v2805_v36 = vmul.f32 0.2, %v2665_v22 }
 0x435   : > { %v2837_v10 = vsel %vm2773_vm7, %v2665_v22, %v2805_v36 }
 0x436   : > { %2871 = vst.msk [vmem:[%s5027_s18 + $0x70] sm:$0xff] %vm2855_vm1, %v2837_v10 }
 0x43a   : > { %v2668_v27 = vpop.f32.mrf.mxu1 }
 0x43b   : > { %vm2774_vm5 = vcmp.gt.f32.partialorder %v2668_v27, 0.0  ;;  %v2806_v13 = vmul.f32 0.2, %v2668_v27 }
 0x43d   : > { %v2838_v48 = vsel %vm2774_vm5, %v2668_v27, %v2806_v13 }
 0x43e   : > { %2872 = vst.msk [vmem:[%s5027_s18 + $0x78] sm:$0x3f] %vm2863_vm0, %v2838_v48 }
 0x43f PF: > { %s20_s30 = sadd.s32 1, %s3351_s30  }
 0x440   : > { %p17_p4 = scmp.ge.s32.totalorder %s20_s30, 4  }
 0x442   :  { %19 = sbr.rel (!%p17_p4) target bundleno = 1 (0x1), region = 102 }

</bundles_post_ra>
